<compile_context>
chip_gen: v5e
topology: v5e:2x2
jax: 0.10.0
libtpu: 0.0.40
codegen_flags: <defaults>
</compile_context>

<pallas_src>
import functools

import jax
import jax.numpy as jnp
from jax.experimental import pallas as pl
from jax.experimental.pallas import tpu as pltpu


_VMEM_LIMIT = 32 * 1024 * 1024          # explicit scoped-VMEM request
_DCONV_VMEM_BUDGET = 20 * 1024 * 1024   # per-step budget (fits v7x comfortably)


# ----------------------------------------------------------------------------
# Helpers
# ----------------------------------------------------------------------------
def _round_up(x, m):
    return (x + m - 1) // m * m


def _matmul_kn(K, N):
    """Padded K/N and tile sizes for the fused matmul path (shared by
    parameter packing and the forward call so weights are padded exactly once)."""
    Np = N if N <= 128 else _round_up(N, 128)
    Kr = _round_up(K, 128)
    if Kr <= 2048:                       # single K pass (no accumulator revisit)
        Kp, tk = Kr, Kr
    else:
        tk = 1024 if Kr % 1024 == 0 else 512
        Kp = _round_up(Kr, tk)
    if Np <= 512:
        tn = Np
    elif Np % 512 == 0:
        tn = 512
    elif Np % 256 == 0:
        tn = 256
    else:
        tn = 128
    return Kp, Np, tk, tn


def _matmul_tm(M, n_blocks):
    """M tile; split M when the parallel grid would collapse to one block (v7x)."""
    tm = min(512, _round_up(M, 8))
    if n_blocks == 1 and _round_up(M, tm) // tm == 1 and M >= 16:
        tm = _round_up((M + 1) // 2, 8)
    return tm


def _dconv_tiles(Hp, Wp, Ho, Wo, Cin, Coutp, taps):
    """Channel-block (tkc) and Cout-block (tn) sizes for the direct-conv kernel."""
    if Cin <= 512:
        tkc = Cin
    else:
        tkc = next((c for c in (512, 256, 128) if Cin % c == 0), Cin)

    def vmem(tkc_, tn_):
        return (2 * Hp * Wp * tkc_ * 2          # double-buffered x block (bf16)
                + 2 * taps * tkc_ * tn_ * 2     # double-buffered w block (bf16)
                + 2 * Ho * Wo * tn_ * 2         # double-buffered out block (bf16)
                + Ho * Wo * tn_ * 4             # f32 accumulator
                + 16 * tn_)                     # scale/shift

    cands = [t for t in (512, 256, 128) if t <= Coutp and Coutp % t == 0] or [Coutp]
    tn = cands[-1]
    for c in cands:
        if vmem(tkc, c) <= _DCONV_VMEM_BUDGET:
            tn = c
            break
    while vmem(tkc, tn) > _DCONV_VMEM_BUDGET and tkc % 256 == 0:
        tkc //= 2
    return tkc, tn


# ----------------------------------------------------------------------------
# Pallas kernels
# ----------------------------------------------------------------------------
def _mm_kernel_single(a_ref, b_ref, scale_ref, shift_ref, *rest, relu, has_res):
    """Single-K-pass fused matmul: no accumulator scratch, direct epilogue."""
    if has_res:
        res_ref, o_ref = rest
    else:
        (o_ref,) = rest
        res_ref = None
    r = jnp.dot(a_ref[...], b_ref[...], preferred_element_type=jnp.float32)
    r = r * scale_ref[...] + shift_ref[...]
    if has_res:
        r = r + res_ref[...].astype(jnp.float32)
    if relu:
        r = jnp.maximum(r, 0.0)
    o_ref[...] = r.astype(o_ref.dtype)


def _mm_kernel_acc(*refs, relu, has_res):
    """Multi-K-pass fused matmul with f32 accumulator scratch (K > 2048)."""
    if has_res:
        a_ref, b_ref, scale_ref, shift_ref, res_ref, o_ref, acc_ref = refs
    else:
        a_ref, b_ref, scale_ref, shift_ref, o_ref, acc_ref = refs
        res_ref = None

    @pl.when(pl.program_id(2) == 0)
    def _():
        acc_ref[...] = jnp.zeros_like(acc_ref)

    acc_ref[...] += jnp.dot(a_ref[...], b_ref[...],
                            preferred_element_type=jnp.float32)

    @pl.when(pl.program_id(2) == pl.num_programs(2) - 1)
    def _():
        r = acc_ref[...] * scale_ref[...] + shift_ref[...]
        if has_res:
            r = r + res_ref[...].astype(jnp.float32)
        if relu:
            r = jnp.maximum(r, 0.0)
        o_ref[...] = r.astype(o_ref.dtype)


def _dconv_kernel(x_ref, w_ref, scale_ref, shift_ref, o_ref, *scratch,
                  kh, kw, dil, Ho, Wo, relu, multi_k):
    """Direct stride-1 conv: in-kernel tap loop over the padded NHWC block."""
    tkc = w_ref.shape[1]
    tn = w_ref.shape[2]

    acc = jnp.zeros((Ho * Wo, tn), jnp.float32)
    for i in range(kh):
        for j in range(kw):
            xs = x_ref[0, i * dil:i * dil + Ho, j * dil:j * dil + Wo, :]
            acc = acc + jnp.dot(xs.reshape(Ho * Wo, tkc), w_ref[i * kw + j],
                                preferred_element_type=jnp.float32)

    def epilogue(v):
        r = v * scale_ref[...] + shift_ref[...]
        if relu:
            r = jnp.maximum(r, 0.0)
        o_ref[0] = r.astype(o_ref.dtype).reshape(Ho, Wo, tn)

    if multi_k:
        acc_ref = scratch[0]

        @pl.when(pl.program_id(2) == 0)
        def _():
            acc_ref[...] = jnp.zeros_like(acc_ref)

        acc_ref[...] += acc

        @pl.when(pl.program_id(2) == pl.num_programs(2) - 1)
        def _():
            epilogue(acc_ref[...])
    else:
        epilogue(acc)


def _maxpool_kernel(x_ref, o_ref, *, Ho, Wo, C):
    """3x3 / stride-2 max pool; input block is packed as (Hp, Wp//2, 2C) so
    even/odd columns are the two lane halves (no strided reads needed)."""
    v = x_ref[0]                                            # (Hp, Wp2, 2C)
    r = jnp.maximum(jnp.maximum(v[0:2 * Ho], v[1:2 * Ho + 1]), v[2:2 * Ho + 2])
    r = r.reshape(Ho, 2, r.shape[1], r.shape[2])[:, 0]      # even output rows
    even = r[:, :, :C]                                      # columns 2x
    odd = r[:, :, C:]                                       # columns 2x+1
    out = jnp.maximum(jnp.maximum(even[:, :Wo, :], odd[:, :Wo, :]),
                      even[:, 1:Wo + 1, :])                 # columns 2x+2
    o_ref[0] = out


# ----------------------------------------------------------------------------
# Fused matmul wrapper (weights may be pre-padded at pack time)
# ----------------------------------------------------------------------------
@functools.partial(jax.jit, static_argnames=("relu", "out_dtype"))
def _matmul_fused(a, b, scale, shift, residual=None, *, relu=False,
                  out_dtype=jnp.bfloat16):
    """out = (a @ b) * scale + shift [+ residual] [ReLU]; bf16 MXU, f32 acc."""
    M, K = a.shape
    Kp, Np, tk, tn = _matmul_kn(b.shape[0], b.shape[1])
    tm = _matmul_tm(M, Np // tn)
    Mp = _round_up(M, tm)

    a_p = a.astype(jnp.bfloat16)
    if (Mp, Kp) != (M, K):
        a_p = jnp.pad(a_p, ((0, Mp - M), (0, Kp - K)))
    b_p = b.astype(jnp.bfloat16)
    if b_p.shape != (Kp, Np):
        b_p = jnp.pad(b_p, ((0, Kp - b.shape[0]), (0, Np - b.shape[1])))
    scale_p = scale.astype(jnp.float32).reshape(1, -1)
    if scale_p.shape[1] != Np:
        scale_p = jnp.pad(scale_p, ((0, 0), (0, Np - scale_p.shape[1])))
    shift_p = shift.astype(jnp.float32).reshape(1, -1)
    if shift_p.shape[1] != Np:
        shift_p = jnp.pad(shift_p, ((0, 0), (0, Np - shift_p.shape[1])))

    has_res = residual is not None
    if has_res:
        r_p = residual.astype(jnp.bfloat16)
        if r_p.shape != (Mp, Np):
            r_p = jnp.pad(r_p, ((0, Mp - r_p.shape[0]), (0, Np - r_p.shape[1])))

    if Kp // tk == 1:
        inputs = [a_p, b_p, scale_p, shift_p]
        in_specs = [
            pl.BlockSpec((tm, Kp), lambda i, j: (i, 0)),
            pl.BlockSpec((Kp, tn), lambda i, j: (0, j)),
            pl.BlockSpec((1, tn), lambda i, j: (0, j)),
            pl.BlockSpec((1, tn), lambda i, j: (0, j)),
        ]
        if has_res:
            inputs.append(r_p)
            in_specs.append(pl.BlockSpec((tm, tn), lambda i, j: (i, j)))
        out = pl.pallas_call(
            functools.partial(_mm_kernel_single, relu=relu, has_res=has_res),
            out_shape=jax.ShapeDtypeStruct((Mp, Np), out_dtype),
            grid_spec=pltpu.PrefetchScalarGridSpec(
                num_scalar_prefetch=0,
                grid=(Mp // tm, Np // tn),
                in_specs=in_specs,
                out_specs=pl.BlockSpec((tm, tn), lambda i, j: (i, j))),
            compiler_params=pltpu.CompilerParams(
                dimension_semantics=("parallel", "parallel"),
                vmem_limit_bytes=_VMEM_LIMIT),
        )(*inputs)
    else:
        inputs = [a_p, b_p, scale_p, shift_p]
        in_specs = [
            pl.BlockSpec((tm, tk), lambda i, j, k: (i, k)),
            pl.BlockSpec((tk, tn), lambda i, j, k: (k, j)),
            pl.BlockSpec((1, tn), lambda i, j, k: (0, j)),
            pl.BlockSpec((1, tn), lambda i, j, k: (0, j)),
        ]
        if has_res:
            inputs.append(r_p)
            in_specs.append(pl.BlockSpec((tm, tn), lambda i, j, k: (i, j)))
        out = pl.pallas_call(
            functools.partial(_mm_kernel_acc, relu=relu, has_res=has_res),
            out_shape=jax.ShapeDtypeStruct((Mp, Np), out_dtype),
            grid_spec=pltpu.PrefetchScalarGridSpec(
                num_scalar_prefetch=0,
                grid=(Mp // tm, Np // tn, Kp // tk),
                in_specs=in_specs,
                out_specs=pl.BlockSpec((tm, tn), lambda i, j, k: (i, j)),
                scratch_shapes=[pltpu.VMEM((tm, tn), jnp.float32)]),
            compiler_params=pltpu.CompilerParams(
                dimension_semantics=("parallel", "parallel", "arbitrary"),
                vmem_limit_bytes=_VMEM_LIMIT),
        )(*inputs)
    return out[:M] if Mp != M else out


# ----------------------------------------------------------------------------
# Conv / pool / upsample wrappers (NHWC bf16 throughout)
# ----------------------------------------------------------------------------
@functools.partial(jax.jit, static_argnames=(
    "kh", "kw", "dilation", "padding", "relu", "out_dtype", "cout"))
def _conv_direct(x, w, scale, shift, *, kh, kw, dilation, padding, relu,
                 out_dtype, cout):
    """Stride-1 conv without materialized im2col (direct Pallas kernel)."""
    N, H, W, Cin = x.shape
    taps, _, Coutp = w.shape
    d = dilation
    Ho = H + 2 * padding - d * (kh - 1)
    Wo = W + 2 * padding - d * (kw - 1)
    Hp, Wp = H + 2 * padding, W + 2 * padding
    xp = x if padding == 0 else jnp.pad(
        x, ((0, 0), (padding, padding), (padding, padding), (0, 0)))
    xp = xp.astype(jnp.bfloat16)

    tkc, tn = _dconv_tiles(Hp, Wp, Ho, Wo, Cin, Coutp, taps)
    assert Cin % tkc == 0, (Cin, tkc)
    kb = Cin // tkc
    multi_k = kb > 1
    kernel = functools.partial(_dconv_kernel, kh=kh, kw=kw, dil=d, Ho=Ho, Wo=Wo,
                               relu=relu, multi_k=multi_k)
    if multi_k:
        grid = (N, Coutp // tn, kb)
        in_specs = [
            pl.BlockSpec((1, Hp, Wp, tkc), lambda b, n, k: (b, 0, 0, k)),
            pl.BlockSpec((taps, tkc, tn), lambda b, n, k: (0, k, n)),
            pl.BlockSpec((1, tn), lambda b, n, k: (0, n)),
            pl.BlockSpec((1, tn), lambda b, n, k: (0, n)),
        ]
        out_spec = pl.BlockSpec((1, Ho, Wo, tn), lambda b, n, k: (b, 0, 0, n))
        scratch = [pltpu.VMEM((Ho * Wo, tn), jnp.float32)]
        sems = ("parallel", "parallel", "arbitrary")
    else:
        grid = (N, Coutp // tn)
        in_specs = [
            pl.BlockSpec((1, Hp, Wp, tkc), lambda b, n: (b, 0, 0, 0)),
            pl.BlockSpec((taps, tkc, tn), lambda b, n: (0, 0, n)),
            pl.BlockSpec((1, tn), lambda b, n: (0, n)),
            pl.BlockSpec((1, tn), lambda b, n: (0, n)),
        ]
        out_spec = pl.BlockSpec((1, Ho, Wo, tn), lambda b, n: (b, 0, 0, n))
        scratch = []
        sems = ("parallel", "parallel")

    out = pl.pallas_call(
        kernel,
        out_shape=jax.ShapeDtypeStruct((N, Ho, Wo, Coutp), out_dtype),
        grid_spec=pltpu.PrefetchScalarGridSpec(
            num_scalar_prefetch=0, grid=grid,
            in_specs=in_specs, out_specs=out_spec, scratch_shapes=scratch),
        compiler_params=pltpu.CompilerParams(
            dimension_semantics=sems, vmem_limit_bytes=_VMEM_LIMIT),
    )(xp, w, scale, shift)
    if Coutp != cout:
        out = out[..., :cout]
    return out


@functools.partial(jax.jit, static_argnames=(
    "kh", "kw", "stride", "padding", "dilation", "relu", "out_dtype", "cout"))
def _conv_matmul(x, b, scale, shift, residual, *, kh, kw, stride, padding,
                 dilation, relu, out_dtype, cout):
    """1x1 / strided convs as a fused matmul (weights pre-padded at pack time)."""
    N, H, W, C = x.shape
    Ho = (H + 2 * padding - dilation * (kh - 1) - 1) // stride + 1
    Wo = (W + 2 * padding - dilation * (kw - 1) - 1) // stride + 1
    if kh == 1 and kw == 1 and padding == 0:
        xs = x[:, ::stride, ::stride, :] if stride > 1 else x
        cols = xs.reshape(N * Ho * Wo, C)
    else:
        # TODO(synk): small XLA im2col kept only for the few strided convs.
        xp = jnp.pad(x, ((0, 0), (padding, padding), (padding, padding), (0, 0)))
        taps = []
        for i in range(kh):
            for j in range(kw):
                hs, ws = i * dilation, j * dilation
                taps.append(jax.lax.slice(
                    xp, (0, hs, ws, 0),
                    (N, hs + stride * (Ho - 1) + 1, ws + stride * (Wo - 1) + 1, C),
                    (1, stride, stride, 1)))
        cols = jnp.concatenate(taps, axis=-1).reshape(N * Ho * Wo, kh * kw * C)
    res2d = None if residual is None else residual.reshape(N * Ho * Wo, -1)
    out = _matmul_fused(cols, b, scale, shift, res2d,
                        relu=relu, out_dtype=out_dtype)
    if out.shape[1] != cout:
        out = out[:, :cout]
    return out.reshape(N, Ho, Wo, cout)


def conv2d(x, cp, relu=False, residual=None, out_dtype=jnp.bfloat16):
    if cp['path'] == 'direct':
        assert residual is None
        return _conv_direct(x, cp['w'], cp['scale'], cp['shift'],
                            kh=cp['kh'], kw=cp['kw'], dilation=cp['dilation'],
                            padding=cp['padding'], relu=relu,
                            out_dtype=out_dtype, cout=cp['cout'])
    return _conv_matmul(x, cp['w'], cp['scale'], cp['shift'], residual,
                        kh=cp['kh'], kw=cp['kw'], stride=cp['stride'],
                        padding=cp['padding'], dilation=cp['dilation'],
                        relu=relu, out_dtype=out_dtype, cout=cp['cout'])


@jax.jit
def maxpool2d_3x3_s2(x):
    """3x3 / stride 2 / pad 1 max pool on NHWC, single Pallas pass (no HBM stack)."""
    N, H, W, C = x.shape
    Ho = (H + 2 - 3) // 2 + 1
    Wo = (W + 2 - 3) // 2 + 1
    Hp, Wp = 2 * Ho + 2, 2 * Wo + 2
    xp = jnp.pad(x, ((0, 0), (1, Hp - H - 1), (1, Wp - W - 1), (0, 0)),
                 constant_values=-jnp.inf)
    xpk = xp.reshape(N, Hp, Wp // 2, 2 * C)     # free reshape: pack even/odd cols
    out = pl.pallas_call(
        functools.partial(_maxpool_kernel, Ho=Ho, Wo=Wo, C=C),
        out_shape=jax.ShapeDtypeStruct((N, Ho, Wo, C), x.dtype),
        grid_spec=pltpu.PrefetchScalarGridSpec(
            num_scalar_prefetch=0, grid=(N,),
            in_specs=[pl.BlockSpec((1, Hp, Wp // 2, 2 * C),
                                   lambda b: (b, 0, 0, 0))],
            out_specs=pl.BlockSpec((1, Ho, Wo, C), lambda b: (b, 0, 0, 0))),
        compiler_params=pltpu.CompilerParams(
            dimension_semantics=("parallel",), vmem_limit_bytes=_VMEM_LIMIT),
    )(xpk)
    return out


def _interp_matrix(in_size, out_size):
    """Bilinear (align_corners=False) interpolation matrix, PyTorch semantics."""
    scale = in_size / out_size
    i = jnp.arange(out_size, dtype=jnp.float32)
    src = jnp.maximum((i + 0.5) * scale - 0.5, 0.0)
    i0 = jnp.minimum(jnp.floor(src).astype(jnp.int32), in_size - 1)
    i1 = jnp.minimum(i0 + 1, in_size - 1)
    lam = src - i0.astype(jnp.float32)
    m = jnp.zeros((out_size, in_size), jnp.float32)
    rows = jnp.arange(out_size)
    m = m.at[rows, i0].add(1.0 - lam)
    m = m.at[rows, i1].add(lam)
    return m


@functools.partial(jax.jit, static_argnames=("out_h", "out_w"))
def bilinear_upsample(x, *, out_h, out_w):
    """NHWC bilinear upsample via two interpolation matmuls (Pallas MXU)."""
    N, H, W, C = x.shape
    mh = _interp_matrix(H, out_h)     # (out_h, H)
    mw = _interp_matrix(W, out_w)     # (out_w, W)
    a = jnp.transpose(x, (0, 2, 3, 1)).reshape(N * W * C, H)
    a = _matmul_fused(a, mh.T, jnp.ones((out_h,), jnp.float32),
                      jnp.zeros((out_h,), jnp.float32), relu=False)
    if a.shape[1] != out_h:
        a = a[:, :out_h]
    a = a.reshape(N, W, C, out_h)
    a = jnp.transpose(a, (0, 3, 2, 1)).reshape(N * out_h * C, W)
    a = _matmul_fused(a, mw.T, jnp.ones((out_w,), jnp.float32),
                      jnp.zeros((out_w,), jnp.float32), relu=False,
                      out_dtype=jnp.float32)
    if a.shape[1] != out_w:
        a = a[:, :out_w]
    a = a.reshape(N, out_h, C, out_w)
    return jnp.transpose(a, (0, 1, 3, 2))      # (N, out_h, out_w, C)


# ----------------------------------------------------------------------------
# Deterministic parameter construction (synthetic weights, ResNet-50 shapes)
# ----------------------------------------------------------------------------
def _conv_w(key, cout, cin, kh, kw):
    fan_in = cin * kh * kw
    return (jax.random.normal(key, (cout, cin, kh, kw), jnp.float32)
            / jnp.sqrt(jnp.float32(fan_in)))


def _bn(key, c, eps=1e-5):
    k1, k2, k3, k4 = jax.random.split(key, 4)
    gamma = 1.0 + 0.1 * jax.random.normal(k1, (c,), jnp.float32)
    beta = 0.1 * jax.random.normal(k2, (c,), jnp.float32)
    mean = 0.1 * jax.random.normal(k3, (c,), jnp.float32)
    var = 1.0 + 0.1 * jnp.abs(jax.random.normal(k4, (c,), jnp.float32))
    scale = gamma / jnp.sqrt(var + eps)
    shift = beta - mean * scale
    return scale, shift


def _pack_conv(w, scale, shift, stride=1, padding=0, dilation=1):
    """Pre-transpose / pre-cast / pre-pad conv weights + fused affine once."""
    cout, cin, kh, kw = w.shape
    scale = scale.astype(jnp.float32).reshape(1, cout)
    shift = shift.astype(jnp.float32).reshape(1, cout)
    if (kh > 1 or kw > 1) and stride == 1:
        # direct-conv path: (kh*kw, Cin, Coutp) bf16
        coutp = cout if (cout <= 128 or cout % 128 == 0) else _round_up(cout, 128)
        wm = jnp.transpose(w, (2, 3, 1, 0)).reshape(kh * kw, cin, cout)
        if coutp != cout:
            wm = jnp.pad(wm, ((0, 0), (0, 0), (0, coutp - cout)))
            scale = jnp.pad(scale, ((0, 0), (0, coutp - cout)))
            shift = jnp.pad(shift, ((0, 0), (0, coutp - cout)))
        return {'path': 'direct', 'w': wm.astype(jnp.bfloat16),
                'scale': scale, 'shift': shift, 'kh': kh, 'kw': kw,
                'stride': stride, 'padding': padding, 'dilation': dilation,
                'cout': cout}
    # matmul path: (Kp, Np) bf16
    K = kh * kw * cin
    Kp, Np, _, _ = _matmul_kn(K, cout)
    wm = jnp.transpose(w, (2, 3, 1, 0)).reshape(K, cout)
    if (Kp, Np) != (K, cout):
        wm = jnp.pad(wm, ((0, Kp - K), (0, Np - cout)))
        scale = jnp.pad(scale, ((0, 0), (0, Np - cout)))
        shift = jnp.pad(shift, ((0, 0), (0, Np - cout)))
    return {'path': 'matmul', 'w': wm.astype(jnp.bfloat16),
            'scale': scale, 'shift': shift, 'kh': kh, 'kw': kw,
            'stride': stride, 'padding': padding, 'dilation': dilation,
            'cout': cout}


def make_params(key, classes=2):
    keys = list(jax.random.split(key, 256))
    it = iter(keys)
    nk = lambda: next(it)

    def conv_bn(cout, cin, kh, kw, **kwargs):
        w = _conv_w(nk(), cout, cin, kh, kw)
        scale, shift = _bn(nk(), cout)
        return _pack_conv(w, scale, shift, **kwargs)

    def conv_bias(cout, cin, kh, kw, **kwargs):
        w = _conv_w(nk(), cout, cin, kh, kw)
        bias = 0.1 * jax.random.normal(nk(), (cout,), jnp.float32)
        return _pack_conv(w, jnp.ones((cout,), jnp.float32), bias, **kwargs)

    p = {'conv1': conv_bn(64, 3, 7, 7, stride=2, padding=3)}

    # (planes, blocks, stride, dilate) — replace_stride_with_dilation=[F, T, T]
    cfg = [(64, 3, 1, False), (128, 4, 2, False),
           (256, 6, 2, True), (512, 3, 2, True)]
    inplanes, dilation = 64, 1
    layers = []
    for planes, blocks, stride, dilate in cfg:
        prev_dilation = dilation
        if dilate:
            dilation *= stride
            stride = 1
        layer = []
        for b in range(blocks):
            blk = {}
            blk['conv1'] = conv_bn(planes, inplanes, 1, 1)
            blk_stride = stride if b == 0 else 1
            blk_dilation = prev_dilation if b == 0 else dilation
            blk['conv2'] = conv_bn(planes, planes, 3, 3, stride=blk_stride,
                                   padding=blk_dilation, dilation=blk_dilation)
            blk['conv3'] = conv_bn(planes * 4, planes, 1, 1)
            if b == 0 and (stride != 1 or inplanes != planes * 4):
                blk['downsample'] = conv_bn(planes * 4, inplanes, 1, 1,
                                            stride=stride)
            inplanes = planes * 4
            layer.append(blk)
        layers.append(layer)
    p['layers'] = layers

    # FCN heads: main (2048 -> 512 -> classes), aux (1024 -> 256 -> classes)
    p['head'] = {'conv1': conv_bn(512, 2048, 3, 3, padding=1),
                 'conv2': conv_bias(classes, 512, 1, 1)}
    p['aux'] = {'conv1': conv_bn(256, 1024, 3, 3, padding=1),
                'conv2': conv_bias(classes, 256, 1, 1)}
    return p


# ----------------------------------------------------------------------------
# Forward pass (eval mode)
# ----------------------------------------------------------------------------
def bottleneck(x, blk):
    identity = x
    out = conv2d(x, blk['conv1'], relu=True)
    out = conv2d(out, blk['conv2'], relu=True)
    if 'downsample' in blk:
        identity = conv2d(x, blk['downsample'], relu=False)
    # residual add + ReLU fused into conv3's Pallas epilogue
    return conv2d(out, blk['conv3'], relu=True, residual=identity)


def fcn_head(x, hp):
    out = conv2d(x, hp['conv1'], relu=True)
    # Dropout(p=0.1) is identity in eval mode.
    return conv2d(out, hp['conv2'], relu=False)


def fcnet_forward(params, x):
    """Eval-mode FCNet forward: x NCHW f32 -> (out_logits, aux_logits), NCHW f32."""
    N, _, H, W = x.shape
    out = jnp.transpose(x, (0, 2, 3, 1)).astype(jnp.bfloat16)   # NHWC bf16
    out = conv2d(out, params['conv1'], relu=True)
    out = maxpool2d_3x3_s2(out)

    feats = {}
    for li, layer in enumerate(params['layers']):
        for blk in layer:
            out = bottleneck(out, blk)
        if li == 2:
            feats['aux'] = out       # layer3 output
        if li == 3:
            feats['out'] = out       # layer4 output

    main = bilinear_upsample(fcn_head(feats['out'], params['head']),
                             out_h=H, out_w=W)
    aux = bilinear_upsample(fcn_head(feats['aux'], params['aux']),
                            out_h=H, out_w=W)
    main = jnp.transpose(main, (0, 3, 1, 2)).astype(jnp.float32)
    aux = jnp.transpose(aux, (0, 3, 1, 2)).astype(jnp.float32)
    return main, aux


# ----------------------------------------------------------------------------
if __name__ == "__main__":
    key = jax.random.PRNGKey(0)
    pkey, xkey = jax.random.split(key)
    classes = 2
    params = make_params(pkey, classes=classes)

    # 64x64 keeps all stride-1 feature maps at widths that are multiples of 8,
    # so the direct-conv kernels use layout-preserving reshapes only.
    x = jax.random.normal(xkey, (2, 3, 64, 64), jnp.float32)  # small NCHW input
    logits, aux_logits = fcnet_forward(params, x)
    jax.block_until_ready(logits)
    jax.block_until_ready(aux_logits)

    assert logits.shape == (2, classes, 64, 64), logits.shape
    assert aux_logits.shape == (2, classes, 64, 64), aux_logits.shape
    assert bool(jnp.all(jnp.isfinite(logits)))
    assert bool(jnp.all(jnp.isfinite(aux_logits)))
    print("KERNEL_OK")
</pallas_src>

<mosaic_0001>
module attributes {stable_mosaic.version = 11 : i64} {
  func.func @_mm_kernel_single(%arg0: i32, %arg1: i32, %arg2: memref<512x256xbf16, #tpu.memory_space<vmem>>, %arg3: memref<256x64xbf16, #tpu.memory_space<vmem>>, %arg4: memref<1x64xf32, #tpu.memory_space<vmem>>, %arg5: memref<1x64xf32, #tpu.memory_space<vmem>>, %arg6: memref<512x64xbf16, #tpu.memory_space<vmem>>) attributes {dimension_semantics = [#tpu.dimension_semantics<parallel>, #tpu.dimension_semantics<parallel>], iteration_bounds = array<i64: 4, 1>, scalar_prefetch = 0 : i64, scratch_operands = 0 : i64, tpu.core_type = #tpu.core_type<tc>, window_params = [{transform_indices = @transform_0, window_bounds = array<i64: 512, 256>}, {transform_indices = @transform_1, window_bounds = array<i64: 256, 64>}, {transform_indices = @transform_2, window_bounds = array<i64: 1, 64>}, {transform_indices = @transform_3, window_bounds = array<i64: 1, 64>}, {transform_indices = @transform_4, window_bounds = array<i64: 512, 64>}]} {
    %c0 = arith.constant 0 : index
    %c0_0 = arith.constant 0 : index
    %0 = vector.load %arg2[%c0, %c0_0] : memref<512x256xbf16, #tpu.memory_space<vmem>>, vector<512x256xbf16>
    %c0_1 = arith.constant 0 : index
    %c0_2 = arith.constant 0 : index
    %1 = vector.load %arg3[%c0_1, %c0_2] : memref<256x64xbf16, #tpu.memory_space<vmem>>, vector<256x64xbf16>
    %cst = arith.constant dense<0.000000e+00> : vector<512x64xf32>
    %2 = tpu.matmul %0, %1, %cst {dimension_numbers = #tpu.dot_dimension_numbers<[1], [0], [0], [1], [0, 0, 1, 1], [], []>} : vector<512x256xbf16>, vector<256x64xbf16>, vector<512x64xf32> -> vector<512x64xf32>
    %c0_3 = arith.constant 0 : index
    %c0_4 = arith.constant 0 : index
    %3 = vector.load %arg4[%c0_3, %c0_4] : memref<1x64xf32, #tpu.memory_space<vmem>>, vector<1x64xf32>
    %4 = vector.broadcast %3 : vector<1x64xf32> to vector<512x64xf32>
    %5 = arith.mulf %2, %4 : vector<512x64xf32>
    %c0_5 = arith.constant 0 : index
    %c0_6 = arith.constant 0 : index
    %6 = vector.load %arg5[%c0_5, %c0_6] : memref<1x64xf32, #tpu.memory_space<vmem>>, vector<1x64xf32>
    %7 = vector.broadcast %6 : vector<1x64xf32> to vector<512x64xf32>
    %8 = arith.addf %5, %7 : vector<512x64xf32>
    %cst_7 = arith.constant 0.000000e+00 : f32
    %9 = vector.broadcast %cst_7 : f32 to vector<512x64xf32>
    %10 = arith.maximumf %8, %9 : vector<512x64xf32>
    %11 = arith.truncf %10 : vector<512x64xf32> to vector<512x64xbf16>
    %c0_8 = arith.constant 0 : index
    %c0_9 = arith.constant 0 : index
    %12 = vector.load %arg6[%c0_8, %c0_9] : memref<512x64xbf16, #tpu.memory_space<vmem>>, vector<512x64xbf16>
    tpu.vector_store %arg6[%c0_8, %c0_9], %11 {strides = array<i32>} : memref<512x64xbf16, #tpu.memory_space<vmem>>, vector<512x64xbf16>,
    return
  }
  func.func @transform_0(%arg0: i32, %arg1: i32) -> (i32, i32) {
    %c0_i32 = arith.constant 0 : i32
    %c0_i32_0 = arith.constant 0 : i32
    return %arg0, %c0_i32 : i32, i32
  }
  func.func @transform_1(%arg0: i32, %arg1: i32) -> (i32, i32) {
    %c0_i32 = arith.constant 0 : i32
    %c0_i32_0 = arith.constant 0 : i32
    return %c0_i32, %arg1 : i32, i32
  }
  func.func @transform_2(%arg0: i32, %arg1: i32) -> (i32, i32) {
    %c0_i32 = arith.constant 0 : i32
    %c0_i32_0 = arith.constant 0 : i32
    return %c0_i32, %arg1 : i32, i32
  }
  func.func @transform_3(%arg0: i32, %arg1: i32) -> (i32, i32) {
    %c0_i32 = arith.constant 0 : i32
    %c0_i32_0 = arith.constant 0 : i32
    return %c0_i32, %arg1 : i32, i32
  }
  func.func @transform_4(%arg0: i32, %arg1: i32) -> (i32, i32) {
    %c0_i32 = arith.constant 0 : i32
    return %arg0, %arg1 : i32, i32
  }
}

</mosaic_0001>

<bundles_post_ra>
// kernel: _matmul_fused.1
= control target key start
LH: loop header
LB: loop body
LE: loop exit
PB: predicated region body
PF: predicated region fallthrough
CT: control target
= control target key end

     0   :  { %s2071_s15 = smov 0   ;;  %s2073_s16 = smov 0   ;;  %s2567_s0 = inlined_call_operand.vmem [shape: bf16[2048,256], index: 0, kind: input, shape index: {}]   ;;  %s2568_s1 = inlined_call_operand.vmem [shape: bf16[256,64], index: 1, kind: input, shape index: {}]   ;;  %s2569_s2 = inlined_call_operand.vmem [shape: f32[1,64], index: 2, kind: input, shape index: {}]   ;;  %s2570_s3 = inlined_call_operand.vmem [shape: f32[1,64], index: 3, kind: input, shape index: {}]   ;;  %s2571_s4 = inlined_call_operand.vmem [shape: bf16[2048,64], index: 4, kind: output, shape index: {}]  }
   0x1   :  { %s2075_s17 = smov 0  }
   0x2 LB: > { %s26_s18 = sadd.s32 1, %s2040_s16  ;;  %p1569_p0 = scmp.ge.s32.totalorder %s2044_s17, 1  ;;  %s2044_s17 = sphi %s2075_s17, %s14_s17   ;;  %s2040_s16 = sphi %s2073_s16, %s2573_s16   ;;  %s2036_s15 = sphi %s2071_s15, %s2572_s15  }
   0x3   : > { %p28_p1 = scmp.ge.s32.totalorder %s26_s18, 4  ;;  %p203_p2 = scmp.lt.s32.totalorder %s2044_s17, 5 }
   0x5   : > { %s2575_s18 = smov (%p28_p1, %s26_s18), 0  ;;  %p204_p3 = pnand %p1569_p0, %p203_p2 }
   0x6   : > { %s1570_s5 = sshll.u32 (!%p204_p3), %s2036_s15, 6 }
   0x7   : > { %207 = sbr.rel (%p204_p3) target bundleno = 436 (0x1b4), region = 36  ;;  %p244_p4 = scmp.lt.s32.totalorder (!%p204_p3), %s1570_s5, 255 }
   0xc   : > { %v1969_v0 = vld [vmem:[%s2568_s1 + $0x38] sm:$0xff]  ;;  %v1968_v2 = vld [vmem:[%s2568_s1 + $0x30] sm:$0xff]  ;;  %v1967_v4 = vld [vmem:[%s2568_s1 + $0x28] sm:$0xff]  ;;  %s2577_s5 = smov (!%p244_p4, %s1570_s5), 255  ;;  %vm1383_vm0 = vcmask 519168  }
   0xd   : > { %v1977_v1 = vld [vmem:[%s2568_s1 + $0x78] sm:$0xff]  ;;  %781 = vmatpush.bf16.msra.mxu0 %v1969_v0  ;;  %1978 = vmatpush.bf16.msra.mxu2 %v1969_v0  ;;  %v1976_v3 = vld [vmem:[%s2568_s1 + $0x70] sm:$0xff]  ;;  %v1975_v5 = vld [vmem:[%s2568_s1 + $0x68] sm:$0xff]  ;;  %s1897_s21 = sshll.u32 %s2577_s5, 3  ;;  %s1574_s12 = sshll.u32 %s2577_s5, 2 }
   0xe   : > { %950 = vmatpush.bf16.msra.mxu1 %v1977_v1  ;;  %1986 = vmatpush.bf16.msra.mxu3 %v1977_v1  ;;  %v1966_v6 = vld [vmem:[%s2568_s1 + $0x20] sm:$0xff]  ;;  %v1965_v8 = vld [vmem:[%s2568_s1 + $0x18] sm:$0xff]  ;;  %v1964_v10 = vld [vmem:[%s2568_s1 + $0x10] sm:$0xff]  ;;  %s2137_s26 = scalar_lea.vmem %s2567_s0, %s1897_s21  ;;  %s2236_s15 = scalar_lea.vmem %s2571_s4, %s1574_s12 }
   0xf   : > { %v1974_v7 = vld [vmem:[%s2568_s1 + $0x60] sm:$0xff]  ;;  %v1973_v9 = vld [vmem:[%s2568_s1 + $0x58] sm:$0xff]  ;;  %v1972_v11 = vld [vmem:[%s2568_s1 + $0x50] sm:$0xff] }
  0x10   : > { %v1963_v12 = vld [vmem:[%s2568_s1 + $0x8] sm:$0xff]  ;;  %v1962_v14 = vld [vmem:[%s2568_s1] sm:$0xff]  ;;  %v1585_v28 = vld [vmem:[%s2137_s26 + $0x10] sm:$0xf] }
  0x11   : > { %782 = vmatpush.bf16.msra.mxu0 %v1968_v2  ;;  %1979 = vmatpush.bf16.msra.mxu2 %v1968_v2  ;;  %v1971_v13 = vld [vmem:[%s2568_s1 + $0x48] sm:$0xff]  ;;  %v1970_v15 = vld [vmem:[%s2568_s1 + $0x40] sm:$0xff]  ;;  %v1901_v29 = vld [vmem:[%s2137_s26 + $0x14] sm:$0xf0] }
  0x12   : > { %951 = vmatpush.bf16.msra.mxu1 %v1976_v3  ;;  %1987 = vmatpush.bf16.msra.mxu3 %v1976_v3  ;;  %v1577_v16 = vld [vmem:[%s2137_s26] sm:$0xf]  ;;  %v1899_v17 = vld [vmem:[%s2137_s26 + $0x4] sm:$0xf0]  ;;  %v1898_v20 = vld [vmem:[%s2137_s26 + $0x4] sm:$0xf]  ;;  %v1586_v36 = vor.u32 %v1901_v29, %v1585_v28 }
  0x13   : > { %v1705_v18 = vld [vmem:[%s2137_s26 + $0x100] sm:$0xf]  ;;  %v1931_v19 = vld [vmem:[%s2137_s26 + $0x104] sm:$0xf0]  ;;  %v1579_v21 = vld [vmem:[%s2137_s26 + $0x8] sm:$0xf0]  ;;  %v1578_v24 = vor.u32 %v1899_v17, %v1577_v16 }
  0x14   : > { %v1930_v22 = vld [vmem:[%s2137_s26 + $0x104] sm:$0xf]  ;;  %v1707_v23 = vld [vmem:[%s2137_s26 + $0x108] sm:$0xf0]  ;;  %v1706_v25 = vor.u32 %v1931_v19, %v1705_v18  ;;  %v1582_v26 = vor.u32 %v1898_v20, %v1579_v21  ;;  %v1713_v30 = vld [vmem:[%s2137_s26 + $0x110] sm:$0xf] }
  0x15   : > { %783 = vmatpush.bf16.msra.mxu0 %v1967_v4  ;;  %1980 = vmatpush.bf16.msra.mxu2 %v1967_v4  ;;  %v1710_v27 = vor.u32 %v1930_v22, %v1707_v23  ;;  %v1933_v31 = vld [vmem:[%s2137_s26 + $0x114] sm:$0xf0]  ;;  %v1900_v32 = vld [vmem:[%s2137_s26 + $0x14] sm:$0xf]  ;;  %v1587_v33 = vld [vmem:[%s2137_s26 + $0x18] sm:$0xf0] }
  0x16   : > { %952 = vmatpush.bf16.msra.mxu1 %v1975_v5  ;;  %1988 = vmatpush.bf16.msra.mxu3 %v1975_v5  ;;  %v1932_v34 = vld [vmem:[%s2137_s26 + $0x114] sm:$0xf]  ;;  %v1715_v35 = vld [vmem:[%s2137_s26 + $0x118] sm:$0xf0]  ;;  %v1714_v37 = vor.u32 %v1933_v31, %v1713_v30  ;;  %v1590_v38 = vor.u32 %v1900_v32, %v1587_v33  ;;  %v1593_v40 = vld [vmem:[%s2137_s26 + $0x20] sm:$0xf] }
  0x17   : > { %v1718_v39 = vor.u32 %v1932_v34, %v1715_v35  ;;  %v1903_v41 = vld [vmem:[%s2137_s26 + $0x24] sm:$0xf0]  ;;  %v1721_v42 = vld [vmem:[%s2137_s26 + $0x120] sm:$0xf]  ;;  %v1902_v44 = vld [vmem:[%s2137_s26 + $0x24] sm:$0xf] }
  0x18   : > { %v1935_v43 = vld [vmem:[%s2137_s26 + $0x124] sm:$0xf0]  ;;  %v1595_v45 = vld [vmem:[%s2137_s26 + $0x28] sm:$0xf0]  ;;  %v1934_v46 = vld [vmem:[%s2137_s26 + $0x124] sm:$0xf]  ;;  %v1594_v48 = vor.u32 %v1903_v41, %v1593_v40 }
  0x19   : > { %784 = vmatpush.bf16.msra.mxu0 %v1966_v6  ;;  %1981 = vmatpush.bf16.msra.mxu2 %v1966_v6  ;;  %v1723_v47 = vld [vmem:[%s2137_s26 + $0x128] sm:$0xf0]  ;;  %v1722_v49 = vor.u32 %v1935_v43, %v1721_v42  ;;  %v1598_v50 = vor.u32 %v1902_v44, %v1595_v45  ;;  %v1601_v52 = vld [vmem:[%s2137_s26 + $0x30] sm:$0xf]  ;;  %v1905_v53 = vld [vmem:[%s2137_s26 + $0x34] sm:$0xf0] }
  0x1a   : > { %953 = vmatpush.bf16.msra.mxu1 %v1974_v7  ;;  %1989 = vmatpush.bf16.msra.mxu3 %v1974_v7  ;;  %v1726_v51 = vor.u32 %v1934_v46, %v1723_v47  ;;  %v1729_v54 = vld [vmem:[%s2137_s26 + $0x130] sm:$0xf]  ;;  %v1937_v55 = vld [vmem:[%s2137_s26 + $0x134] sm:$0xf0]  ;;  %v1904_v56 = vld [vmem:[%s2137_s26 + $0x34] sm:$0xf]  ;;  %v1602_v60 = vor.u32 %v1905_v53, %v1601_v52 }
  0x1b   : > { %v1603_v57 = vld [vmem:[%s2137_s26 + $0x38] sm:$0xf0]  ;;  %v1936_v58 = vld [vmem:[%s2137_s26 + $0x134] sm:$0xf]  ;;  %v1730_v61 = vor.u32 %v1937_v55, %v1729_v54  ;;  %v1609_v0 = vld [vmem:[%s2137_s26 + $0x40] sm:$0xf] }
  0x1c   : > { %v1731_v59 = vld [vmem:[%s2137_s26 + $0x138] sm:$0xf0]  ;;  %v1606_v62 = vor.u32 %v1904_v56, %v1603_v57  ;;  %v1907_v1 = vld [vmem:[%s2137_s26 + $0x44] sm:$0xf0]  ;;  %v1737_v2 = vld [vmem:[%s2137_s26 + $0x140] sm:$0xf] }
  0x1d   : > { %785 = vmatpush.bf16.msra.mxu0 %v1965_v8  ;;  %1982 = vmatpush.bf16.msra.mxu2 %v1965_v8  ;;  %v1734_v63 = vor.u32 %v1936_v58, %v1731_v59  ;;  %v1939_v3 = vld [vmem:[%s2137_s26 + $0x144] sm:$0xf0]  ;;  %v1906_v4 = vld [vmem:[%s2137_s26 + $0x44] sm:$0xf]  ;;  %v1611_v5 = vld [vmem:[%s2137_s26 + $0x48] sm:$0xf0]  ;;  %v1610_v8 = vor.u32 %v1907_v1, %v1609_v0 }
  0x1e   : > { %954 = vmatpush.bf16.msra.mxu1 %v1973_v9  ;;  %1990 = vmatpush.bf16.msra.mxu3 %v1973_v9  ;;  %v1938_v6 = vld [vmem:[%s2137_s26 + $0x144] sm:$0xf]  ;;  %v1739_v7 = vld [vmem:[%s2137_s26 + $0x148] sm:$0xf0]  ;;  %v1738_v9 = vor.u32 %v1939_v3, %v1737_v2  ;;  %v1908_v16 = vld [vmem:[%s2137_s26 + $0x54] sm:$0xf] }
  0x1f   : > { %v1619_v17 = vld [vmem:[%s2137_s26 + $0x58] sm:$0xf0]  ;;  %v1940_v18 = vld [vmem:[%s2137_s26 + $0x154] sm:$0xf]  ;;  %v1910_v28 = vld [vmem:[%s2137_s26 + $0x64] sm:$0xf] }
  0x20   : > { %v1747_v19 = vld [vmem:[%s2137_s26 + $0x158] sm:$0xf0]  ;;  %v1622_v22 = vor.u32 %v1908_v16, %v1619_v17  ;;  %v1627_v29 = vld [vmem:[%s2137_s26 + $0x68] sm:$0xf0]  ;;  %v1942_v30 = vld [vmem:[%s2137_s26 + $0x164] sm:$0xf] }
  0x21   : > { %786 = vmatpush.bf16.msra.mxu0 %v1964_v10  ;;  %1983 = vmatpush.bf16.msra.mxu2 %v1964_v10  ;;  %v1614_v10 = vor.u32 %v1906_v4, %v1611_v5  ;;  %v1750_v23 = vor.u32 %v1940_v18, %v1747_v19  ;;  %v1755_v31 = vld [vmem:[%s2137_s26 + $0x168] sm:$0xf0]  ;;  %v1630_v34 = vor.u32 %v1910_v28, %v1627_v29  ;;  %v1912_v40 = vld [vmem:[%s2137_s26 + $0x74] sm:$0xf]  ;;  %v1635_v41 = vld [vmem:[%s2137_s26 + $0x78] sm:$0xf0] }
  0x22   : > { %955 = vmatpush.bf16.msra.mxu1 %v1972_v11  ;;  %1991 = vmatpush.bf16.msra.mxu3 %v1972_v11  ;;  %v1742_v11 = vor.u32 %v1938_v6, %v1739_v7  ;;  %v1758_v35 = vor.u32 %v1942_v30, %v1755_v31  ;;  %v1944_v42 = vld [vmem:[%s2137_s26 + $0x174] sm:$0xf]  ;;  %v1763_v43 = vld [vmem:[%s2137_s26 + $0x178] sm:$0xf0]  ;;  %v1638_v46 = vor.u32 %v1912_v40, %v1635_v41  ;;  %v1914_v52 = vld [vmem:[%s2137_s26 + $0x84] sm:$0xf] }
  0x23   : > { %v1766_v47 = vor.u32 %v1944_v42, %v1763_v43  ;;  %v1643_v53 = vld [vmem:[%s2137_s26 + $0x88] sm:$0xf0]  ;;  %v1946_v54 = vld [vmem:[%s2137_s26 + $0x184] sm:$0xf]  ;;  %v2223_v59 = vld [vmem:[%s2569_s2] ss:$0 sm:$0xff] }
  0x24   : > { %v1771_v55 = vld [vmem:[%s2137_s26 + $0x188] sm:$0xf0]  ;;  %v2228_v0 = vld [vmem:[%s2570_s3] ss:$0 sm:$0xff]  ;;  %v1916_v18 = vld [vmem:[%s2137_s26 + $0x94] sm:$0xf] }
  0x25   : > { %787 = vmatpush.bf16.msra.mxu0 %v1963_v12  ;;  %1984 = vmatpush.bf16.msra.mxu2 %v1963_v12  ;;  %v1617_v12 = vld [vmem:[%s2137_s26 + $0x50] sm:$0xf]  ;;  %v1651_v19 = vld [vmem:[%s2137_s26 + $0x98] sm:$0xf0] }
  0x26   : > { %956 = vmatpush.bf16.msra.mxu1 %v1971_v13  ;;  %1992 = vmatpush.bf16.msra.mxu3 %v1971_v13  ;;  %v1909_v13 = vld [vmem:[%s2137_s26 + $0x54] sm:$0xf0]  ;;  %v1654_v28 = vor.u32 %v1916_v18, %v1651_v19 }
  0x27   : > { %v1618_v20 = vor.u32 %v1909_v13, %v1617_v12  ;;  %v1649_v12 = vld [vmem:[%s2137_s26 + $0x90] sm:$0xf]  ;;  %v1917_v13 = vld [vmem:[%s2137_s26 + $0x94] sm:$0xf0] }
  0x29   : > { %788 = vmatpush.bf16.msra.mxu0 %v1962_v14  ;;  %1985 = vmatpush.bf16.msra.mxu2 %v1962_v14  ;;  %v1745_v14 = vld [vmem:[%s2137_s26 + $0x150] sm:$0xf] }
  0x2a   : > { %957 = vmatpush.bf16.msra.mxu1 %v1970_v15  ;;  %1993 = vmatpush.bf16.msra.mxu3 %v1970_v15  ;;  %v1941_v15 = vld [vmem:[%s2137_s26 + $0x154] sm:$0xf0] }
  0x2b   : > { %v1746_v21 = vor.u32 %v1941_v15, %v1745_v14  ;;  %v1777_v14 = vld [vmem:[%s2137_s26 + $0x190] sm:$0xf]  ;;  %v1949_v15 = vld [vmem:[%s2137_s26 + $0x194] sm:$0xf0] }
  0x2c   : > { %789 = vmatmul.bf16.vlgmr.msra.gmra.mxu0 %v1578_v24  ;;  %869 = vmatmul.bf16.vlgmr.msra.gmra.mxu2 %v1706_v25  ;;  %v1625_v24 = vld [vmem:[%s2137_s26 + $0x60] sm:$0xf]  ;;  %v1911_v25 = vld [vmem:[%s2137_s26 + $0x64] sm:$0xf0] }
  0x2d   : > { %958 = vmatmul.bf16.vlgmr.msra.gmra.mxu1 %v1582_v26  ;;  %1038 = vmatmul.bf16.vlgmr.msra.gmra.mxu3 %v1710_v27  ;;  %v1753_v26 = vld [vmem:[%s2137_s26 + $0x160] sm:$0xf]  ;;  %v1943_v27 = vld [vmem:[%s2137_s26 + $0x164] sm:$0xf0]  ;;  %v1626_v32 = vor.u32 %v1911_v25, %v1625_v24 }
  0x2e   : > { %v1754_v33 = vor.u32 %v1943_v27, %v1753_v26  ;;  %v1650_v26 = vor.u32 %v1917_v13, %v1649_v12  ;;  %v1778_v27 = vor.u32 %v1949_v15, %v1777_v14 }
  0x3c   : > { %794 = vmatmul.bf16.gmra.mxu0 %v1586_v36  ;;  %874 = vmatmul.bf16.gmra.mxu2 %v1714_v37  ;;  %v1633_v36 = vld [vmem:[%s2137_s26 + $0x70] sm:$0xf]  ;;  %v1913_v37 = vld [vmem:[%s2137_s26 + $0x74] sm:$0xf0] }
  0x3d   : > { %963 = vmatmul.bf16.gmra.mxu1 %v1590_v38  ;;  %1043 = vmatmul.bf16.gmra.mxu3 %v1718_v39  ;;  %v1761_v38 = vld [vmem:[%s2137_s26 + $0x170] sm:$0xf]  ;;  %v1945_v39 = vld [vmem:[%s2137_s26 + $0x174] sm:$0xf0]  ;;  %v1634_v44 = vor.u32 %v1913_v37, %v1633_v36 }
  0x3e   : > { %v1762_v45 = vor.u32 %v1945_v39, %v1761_v38 }
  0x4c   : > { %799 = vmatmul.bf16.gmra.mxu0 %v1594_v48  ;;  %879 = vmatmul.bf16.gmra.mxu2 %v1722_v49  ;;  %v1641_v48 = vld [vmem:[%s2137_s26 + $0x80] sm:$0xf]  ;;  %v1915_v49 = vld [vmem:[%s2137_s26 + $0x84] sm:$0xf0] }
  0x4d   : > { %968 = vmatmul.bf16.gmra.mxu1 %v1598_v50  ;;  %1048 = vmatmul.bf16.gmra.mxu3 %v1726_v51  ;;  %v1769_v50 = vld [vmem:[%s2137_s26 + $0x180] sm:$0xf]  ;;  %v1947_v51 = vld [vmem:[%s2137_s26 + $0x184] sm:$0xf0]  ;;  %v1642_v56 = vor.u32 %v1915_v49, %v1641_v48 }
  0x4e   : > { %v1770_v57 = vor.u32 %v1947_v51, %v1769_v50 }
  0x5c   : > { %804 = vmatmul.bf16.gmra.mxu0 %v1602_v60  ;;  %884 = vmatmul.bf16.gmra.mxu2 %v1730_v61  ;;  %v1646_v60 = vor.u32 %v1914_v52, %v1643_v53  ;;  %v1774_v61 = vor.u32 %v1946_v54, %v1771_v55  ;;  %v1657_v52 = vld [vmem:[%s2137_s26 + $0xa0] sm:$0xf]  ;;  %v1919_v53 = vld [vmem:[%s2137_s26 + $0xa4] sm:$0xf0] }
  0x5d   : > { %973 = vmatmul.bf16.gmra.mxu1 %v1606_v62  ;;  %1053 = vmatmul.bf16.gmra.mxu3 %v1734_v63  ;;  %v1785_v54 = vld [vmem:[%s2137_s26 + $0x1a0] sm:$0xf]  ;;  %v1951_v55 = vld [vmem:[%s2137_s26 + $0x1a4] sm:$0xf0] }
  0x6c   : > { %809 = vmatmul.bf16.gmra.mxu0 %v1610_v8  ;;  %889 = vmatmul.bf16.gmra.mxu2 %v1738_v9 }
  0x6d   : > { %978 = vmatmul.bf16.gmra.mxu1 %v1614_v10  ;;  %1058 = vmatmul.bf16.gmra.mxu3 %v1742_v11 }
  0x7c   : > { %814 = vmatmul.bf16.gmra.mxu0 %v1618_v20  ;;  %894 = vmatmul.bf16.gmra.mxu2 %v1746_v21  ;;  %v1948_v20 = vld [vmem:[%s2137_s26 + $0x194] sm:$0xf]  ;;  %v1779_v21 = vld [vmem:[%s2137_s26 + $0x198] sm:$0xf0] }
  0x7d   : > { %983 = vmatmul.bf16.gmra.mxu1 %v1622_v22  ;;  %1063 = vmatmul.bf16.gmra.mxu3 %v1750_v23 }
  0x8c   : > { %819 = vmatmul.bf16.gmra.mxu0 %v1626_v32  ;;  %899 = vmatmul.bf16.gmra.mxu2 %v1754_v33  ;;  %v1782_v33 = vor.u32 %v1948_v20, %v1779_v21 }
  0x8d   : > { %988 = vmatmul.bf16.gmra.mxu1 %v1630_v34  ;;  %1068 = vmatmul.bf16.gmra.mxu3 %v1758_v35 }
  0x9c   : > { %824 = vmatmul.bf16.gmra.mxu0 %v1634_v44  ;;  %904 = vmatmul.bf16.gmra.mxu2 %v1762_v45 }
  0x9d   : > { %993 = vmatmul.bf16.gmra.mxu1 %v1638_v46  ;;  %1073 = vmatmul.bf16.gmra.mxu3 %v1766_v47 }
  0xa9   : > { %v790_v58 = vpop.f32.mrf.mxu0 }
  0xaa   : > { %v959_v62 = vpop.f32.mrf.mxu1 }
  0xab   : > { %v960_v63 = vadd.f32 %v959_v62, %v790_v58  ;;  %v1918_v58 = vld [vmem:[%s2137_s26 + $0xa4] sm:$0xf]  ;;  %v1787_v62 = vld [vmem:[%s2137_s26 + $0x1a8] sm:$0xf0] }
  0xac   : > { %829 = vmatmul.bf16.gmra.mxu0 %v1642_v56  ;;  %909 = vmatmul.bf16.gmra.mxu2 %v1770_v57 }
  0xad   : > { %v1123_v1 = vmul.f32 %v2223_v59, %v960_v63  ;;  %998 = vmatmul.bf16.gmra.mxu1 %v1646_v60  ;;  %1078 = vmatmul.bf16.gmra.mxu3 %v1774_v61  ;;  %v1659_v60 = vld [vmem:[%s2137_s26 + $0xa8] sm:$0xf0]  ;;  %v1950_v61 = vld [vmem:[%s2137_s26 + $0x1a4] sm:$0xf] }
  0xaf   : > { %v1191_v2 = vadd.f32 %v2228_v0, %v1123_v1  ;;  %v870_v3 = vpop.f32.mrf.mxu2 }
  0xb0   : > { %v1039_v4 = vpop.f32.mrf.mxu3 }
  0xb1   : > { %v1255_v5 = vmax.f32 %v1191_v2, 0.0  ;;  %v1040_v6 = vadd.f32 %v1039_v4, %v870_v3  ;;  %v792_v7 = vpop.f32.mrf.mxu0  ;;  %v1658_v4 = vor.u32 %v1919_v53, %v1657_v52 }
  0xb2   : > { %v961_v8 = vpop.f32.mrf.mxu1 }
  0xb3   : > { %v1319_v9 = vpack.c.bf16 %v1255_v5, %v1255_v5  ;;  %v1155_v10 = vmul.f32 %v2223_v59, %v1040_v6  ;;  %v962_v11 = vadd.f32 %v961_v8, %v792_v7  ;;  %v1786_v5 = vor.u32 %v1951_v55, %v1785_v54 }
  0xb4   : > { %v1662_v6 = vor.u32 %v1918_v58, %v1659_v60 }
  0xb5   : > { %1384 = vst.msk [vmem:[%s2236_s15] sm:$0xf] %vm1383_vm0, %v1319_v9  ;;  %v1223_v16 = vadd.f32 %v2228_v0, %v1155_v10  ;;  %v1124_v17 = vmul.f32 %v2223_v59, %v962_v11  ;;  %v1790_v11 = vor.u32 %v1950_v61, %v1787_v62 }
  0xb7   : > { %v1287_v22 = vmax.f32 %v1223_v16, 0.0  ;;  %v1192_v23 = vadd.f32 %v2228_v0, %v1124_v17  ;;  %v872_v24 = vpop.f32.mrf.mxu2 }
  0xb8   : > { %v1041_v25 = vpop.f32.mrf.mxu3 }
  0xb9   : > { %v1351_v29 = vpack.c.bf16 %v1287_v22, %v1287_v22  ;;  %v1256_v30 = vmax.f32 %v1192_v23, 0.0  ;;  %v1042_v31 = vadd.f32 %v1041_v25, %v872_v24  ;;  %v795_v32 = vpop.f32.mrf.mxu0 }
  0xba   : > { %v964_v34 = vpop.f32.mrf.mxu1 }
  0xbb   : > { %1416 = vst.msk [vmem:[%s2236_s15 + $0x80] sm:$0xf] %vm1383_vm0, %v1351_v29  ;;  %v1320_v35 = vpack.c.bf16 %v1256_v30, %v1256_v30  ;;  %v1156_v36 = vmul.f32 %v2223_v59, %v1042_v31  ;;  %v965_v37 = vadd.f32 %v964_v34, %v795_v32  ;;  %v1665_v30 = vld [vmem:[%s2137_s26 + $0xb0] sm:$0xf]  ;;  %v1921_v31 = vld [vmem:[%s2137_s26 + $0xb4] sm:$0xf0] }
  0xbc   : > { %834 = vmatmul.bf16.gmra.mxu0 %v1650_v26  ;;  %914 = vmatmul.bf16.gmra.mxu2 %v1778_v27  ;;  %v1793_v32 = vld [vmem:[%s2137_s26 + $0x1b0] sm:$0xf] }
  0xbd   : > { %1385 = vst.msk [vmem:[%s2236_s15 + $0x4] sm:$0xf] %vm1383_vm0, %v1320_v35  ;;  %v1224_v38 = vadd.f32 %v2228_v0, %v1156_v36  ;;  %v1125_v39 = vmul.f32 %v2223_v59, %v965_v37  ;;  %1003 = vmatmul.bf16.gmra.mxu1 %v1654_v28  ;;  %1083 = vmatmul.bf16.gmra.mxu3 %v1782_v33  ;;  %v1953_v33 = vld [vmem:[%s2137_s26 + $0x1b4] sm:$0xf0]  ;;  %v1920_v36 = vld [vmem:[%s2137_s26 + $0xb4] sm:$0xf] }
  0xbe   : > { %v1667_v37 = vld [vmem:[%s2137_s26 + $0xb8] sm:$0xf0] }
  0xbf   : > { %v1288_v40 = vmax.f32 %v1224_v38, 0.0  ;;  %v1193_v41 = vadd.f32 %v2228_v0, %v1125_v39  ;;  %v875_v42 = vpop.f32.mrf.mxu2  ;;  %v1952_v38 = vld [vmem:[%s2137_s26 + $0x1b4] sm:$0xf]  ;;  %v1795_v39 = vld [vmem:[%s2137_s26 + $0x1b8] sm:$0xf0] }
  0xc0   : > { %v1044_v43 = vpop.f32.mrf.mxu3 }
  0xc1   : > { %v1352_v44 = vpack.c.bf16 %v1288_v40, %v1288_v40  ;;  %v1257_v45 = vmax.f32 %v1193_v41, 0.0  ;;  %v1045_v46 = vadd.f32 %v1044_v43, %v875_v42  ;;  %v797_v47 = vpop.f32.mrf.mxu0 }
  0xc2   : > { %v966_v48 = vpop.f32.mrf.mxu1 }
  0xc3   : > { %1417 = vst.msk [vmem:[%s2236_s15 + $0x84] sm:$0xf] %vm1383_vm0, %v1352_v44  ;;  %v1321_v49 = vpack.c.bf16 %v1257_v45, %v1257_v45  ;;  %v1157_v50 = vmul.f32 %v2223_v59, %v1045_v46  ;;  %v967_v51 = vadd.f32 %v966_v48, %v797_v47  ;;  %v1666_v44 = vor.u32 %v1921_v31, %v1665_v30 }
  0xc4   : > { %v1794_v45 = vor.u32 %v1953_v33, %v1793_v32  ;;  %v1670_v46 = vor.u32 %v1920_v36, %v1667_v37 }
  0xc5   : > { %1386 = vst.msk [vmem:[%s2236_s15 + $0x8] sm:$0xf] %vm1383_vm0, %v1321_v49  ;;  %v1225_v56 = vadd.f32 %v2228_v0, %v1157_v50  ;;  %v1126_v57 = vmul.f32 %v2223_v59, %v967_v51  ;;  %v1798_v51 = vor.u32 %v1952_v38, %v1795_v39 }
  0xc7   : > { %v1289_v63 = vmax.f32 %v1225_v56, 0.0  ;;  %v1194_v1 = vadd.f32 %v2228_v0, %v1126_v57  ;;  %v877_v2 = vpop.f32.mrf.mxu2 }
  0xc8   : > { %v1046_v3 = vpop.f32.mrf.mxu3 }
  0xc9   : > { %v1353_v7 = vpack.c.bf16 %v1289_v63, %v1289_v63  ;;  %v1258_v8 = vmax.f32 %v1194_v1, 0.0  ;;  %v1047_v9 = vadd.f32 %v1046_v3, %v877_v2  ;;  %v800_v10 = vpop.f32.mrf.mxu0 }
  0xca   : > { %v969_v12 = vpop.f32.mrf.mxu1 }
  0xcb   : > { %1418 = vst.msk [vmem:[%s2236_s15 + $0x88] sm:$0xf] %vm1383_vm0, %v1353_v7  ;;  %v1322_v13 = vpack.c.bf16 %v1258_v8, %v1258_v8  ;;  %v1158_v14 = vmul.f32 %v2223_v59, %v1047_v9  ;;  %v970_v15 = vadd.f32 %v969_v12, %v800_v10  ;;  %v1673_v8 = vld [vmem:[%s2137_s26 + $0xc0] sm:$0xf]  ;;  %v1923_v9 = vld [vmem:[%s2137_s26 + $0xc4] sm:$0xf0] }
  0xcc   : > { %839 = vmatmul.bf16.gmra.mxu0 %v1658_v4  ;;  %919 = vmatmul.bf16.gmra.mxu2 %v1786_v5  ;;  %v1801_v10 = vld [vmem:[%s2137_s26 + $0x1c0] sm:$0xf] }
  0xcd   : > { %1387 = vst.msk [vmem:[%s2236_s15 + $0xc] sm:$0xf] %vm1383_vm0, %v1322_v13  ;;  %v1226_v16 = vadd.f32 %v2228_v0, %v1158_v14  ;;  %v1127_v17 = vmul.f32 %v2223_v59, %v970_v15  ;;  %1008 = vmatmul.bf16.gmra.mxu1 %v1662_v6  ;;  %1088 = vmatmul.bf16.gmra.mxu3 %v1790_v11  ;;  %v1955_v11 = vld [vmem:[%s2137_s26 + $0x1c4] sm:$0xf0]  ;;  %v1922_v14 = vld [vmem:[%s2137_s26 + $0xc4] sm:$0xf] }
  0xce   : > { %v1675_v15 = vld [vmem:[%s2137_s26 + $0xc8] sm:$0xf0] }
  0xcf   : > { %v1290_v18 = vmax.f32 %v1226_v16, 0.0  ;;  %v1195_v19 = vadd.f32 %v2228_v0, %v1127_v17  ;;  %v880_v20 = vpop.f32.mrf.mxu2  ;;  %v1954_v16 = vld [vmem:[%s2137_s26 + $0x1c4] sm:$0xf]  ;;  %v1803_v17 = vld [vmem:[%s2137_s26 + $0x1c8] sm:$0xf0] }
  0xd0   : > { %v1049_v21 = vpop.f32.mrf.mxu3 }
  0xd1   : > { %v1354_v22 = vpack.c.bf16 %v1290_v18, %v1290_v18  ;;  %v1259_v23 = vmax.f32 %v1195_v19, 0.0  ;;  %v1050_v24 = vadd.f32 %v1049_v21, %v880_v20  ;;  %v802_v25 = vpop.f32.mrf.mxu0 }
  0xd2   : > { %v971_v26 = vpop.f32.mrf.mxu1 }
  0xd3   : > { %1419 = vst.msk [vmem:[%s2236_s15 + $0x8c] sm:$0xf] %vm1383_vm0, %v1354_v22  ;;  %v1323_v27 = vpack.c.bf16 %v1259_v23, %v1259_v23  ;;  %v1159_v28 = vmul.f32 %v2223_v59, %v1050_v24  ;;  %v972_v29 = vadd.f32 %v971_v26, %v802_v25  ;;  %v1674_v22 = vor.u32 %v1923_v9, %v1673_v8 }
  0xd4   : > { %v1802_v23 = vor.u32 %v1955_v11, %v1801_v10  ;;  %v1678_v24 = vor.u32 %v1922_v14, %v1675_v15 }
  0xd5   : > { %1388 = vst.msk [vmem:[%s2236_s15 + $0x10] sm:$0xf] %vm1383_vm0, %v1323_v27  ;;  %v1227_v34 = vadd.f32 %v2228_v0, %v1159_v28  ;;  %v1128_v35 = vmul.f32 %v2223_v59, %v972_v29  ;;  %v1806_v29 = vor.u32 %v1954_v16, %v1803_v17 }
  0xd7   : > { %v1291_v40 = vmax.f32 %v1227_v34, 0.0  ;;  %v1196_v41 = vadd.f32 %v2228_v0, %v1128_v35  ;;  %v882_v42 = vpop.f32.mrf.mxu2 }
  0xd8   : > { %v1051_v43 = vpop.f32.mrf.mxu3 }
  0xd9   : > { %v1355_v47 = vpack.c.bf16 %v1291_v40, %v1291_v40  ;;  %v1260_v48 = vmax.f32 %v1196_v41, 0.0  ;;  %v1052_v49 = vadd.f32 %v1051_v43, %v882_v42  ;;  %v805_v50 = vpop.f32.mrf.mxu0 }
  0xda   : > { %v974_v52 = vpop.f32.mrf.mxu1 }
  0xdb   : > { %1420 = vst.msk [vmem:[%s2236_s15 + $0x90] sm:$0xf] %vm1383_vm0, %v1355_v47  ;;  %v1324_v53 = vpack.c.bf16 %v1260_v48, %v1260_v48  ;;  %v1160_v54 = vmul.f32 %v2223_v59, %v1052_v49  ;;  %v975_v55 = vadd.f32 %v974_v52, %v805_v50  ;;  %v1681_v48 = vld [vmem:[%s2137_s26 + $0xd0] sm:$0xf]  ;;  %v1925_v49 = vld [vmem:[%s2137_s26 + $0xd4] sm:$0xf0] }
  0xdc   : > { %844 = vmatmul.bf16.gmra.mxu0 %v1666_v44  ;;  %924 = vmatmul.bf16.gmra.mxu2 %v1794_v45  ;;  %v1809_v50 = vld [vmem:[%s2137_s26 + $0x1d0] sm:$0xf] }
  0xdd   : > { %1389 = vst.msk [vmem:[%s2236_s15 + $0x14] sm:$0xf] %vm1383_vm0, %v1324_v53  ;;  %v1228_v56 = vadd.f32 %v2228_v0, %v1160_v54  ;;  %v1129_v57 = vmul.f32 %v2223_v59, %v975_v55  ;;  %1013 = vmatmul.bf16.gmra.mxu1 %v1670_v46  ;;  %1093 = vmatmul.bf16.gmra.mxu3 %v1798_v51  ;;  %v1957_v51 = vld [vmem:[%s2137_s26 + $0x1d4] sm:$0xf0]  ;;  %v1924_v54 = vld [vmem:[%s2137_s26 + $0xd4] sm:$0xf] }
  0xde   : > { %v1683_v55 = vld [vmem:[%s2137_s26 + $0xd8] sm:$0xf0] }
  0xdf   : > { %v1292_v58 = vmax.f32 %v1228_v56, 0.0  ;;  %v1197_v60 = vadd.f32 %v2228_v0, %v1129_v57  ;;  %v885_v61 = vpop.f32.mrf.mxu2  ;;  %v1956_v56 = vld [vmem:[%s2137_s26 + $0x1d4] sm:$0xf]  ;;  %v1811_v57 = vld [vmem:[%s2137_s26 + $0x1d8] sm:$0xf0] }
  0xe0   : > { %v1054_v62 = vpop.f32.mrf.mxu3 }
  0xe1   : > { %v1356_v63 = vpack.c.bf16 %v1292_v58, %v1292_v58  ;;  %v1261_v1 = vmax.f32 %v1197_v60, 0.0  ;;  %v1055_v2 = vadd.f32 %v1054_v62, %v885_v61  ;;  %v807_v3 = vpop.f32.mrf.mxu0 }
  0xe2   : > { %v976_v4 = vpop.f32.mrf.mxu1 }
  0xe3   : > { %1421 = vst.msk [vmem:[%s2236_s15 + $0x94] sm:$0xf] %vm1383_vm0, %v1356_v63  ;;  %v1325_v5 = vpack.c.bf16 %v1261_v1, %v1261_v1  ;;  %v1161_v6 = vmul.f32 %v2223_v59, %v1055_v2  ;;  %v977_v7 = vadd.f32 %v976_v4, %v807_v3  ;;  %v1682_v63 = vor.u32 %v1925_v49, %v1681_v48 }
  0xe4   : > { %v1810_v1 = vor.u32 %v1957_v51, %v1809_v50  ;;  %v1686_v2 = vor.u32 %v1924_v54, %v1683_v55 }
  0xe5   : > { %1390 = vst.msk [vmem:[%s2236_s15 + $0x18] sm:$0xf] %vm1383_vm0, %v1325_v5  ;;  %v1229_v12 = vadd.f32 %v2228_v0, %v1161_v6  ;;  %v1130_v13 = vmul.f32 %v2223_v59, %v977_v7  ;;  %v1814_v7 = vor.u32 %v1956_v56, %v1811_v57 }
  0xe7   : > { %v1293_v18 = vmax.f32 %v1229_v12, 0.0  ;;  %v1198_v19 = vadd.f32 %v2228_v0, %v1130_v13  ;;  %v887_v20 = vpop.f32.mrf.mxu2 }
  0xe8   : > { %v1056_v21 = vpop.f32.mrf.mxu3 }
  0xe9   : > { %v1357_v25 = vpack.c.bf16 %v1293_v18, %v1293_v18  ;;  %v1262_v26 = vmax.f32 %v1198_v19, 0.0  ;;  %v1057_v27 = vadd.f32 %v1056_v21, %v887_v20  ;;  %v810_v28 = vpop.f32.mrf.mxu0 }
  0xea   : > { %v979_v30 = vpop.f32.mrf.mxu1 }
  0xeb   : > { %1422 = vst.msk [vmem:[%s2236_s15 + $0x98] sm:$0xf] %vm1383_vm0, %v1357_v25  ;;  %v1326_v31 = vpack.c.bf16 %v1262_v26, %v1262_v26  ;;  %v1162_v32 = vmul.f32 %v2223_v59, %v1057_v27  ;;  %v980_v33 = vadd.f32 %v979_v30, %v810_v28  ;;  %v1689_v26 = vld [vmem:[%s2137_s26 + $0xe0] sm:$0xf]  ;;  %v1927_v27 = vld [vmem:[%s2137_s26 + $0xe4] sm:$0xf0] }
  0xec   : > { %849 = vmatmul.bf16.gmra.mxu0 %v1674_v22  ;;  %929 = vmatmul.bf16.gmra.mxu2 %v1802_v23  ;;  %v1817_v28 = vld [vmem:[%s2137_s26 + $0x1e0] sm:$0xf] }
  0xed   : > { %1391 = vst.msk [vmem:[%s2236_s15 + $0x1c] sm:$0xf] %vm1383_vm0, %v1326_v31  ;;  %v1230_v34 = vadd.f32 %v2228_v0, %v1162_v32  ;;  %v1131_v35 = vmul.f32 %v2223_v59, %v980_v33  ;;  %1018 = vmatmul.bf16.gmra.mxu1 %v1678_v24  ;;  %1098 = vmatmul.bf16.gmra.mxu3 %v1806_v29  ;;  %v1959_v29 = vld [vmem:[%s2137_s26 + $0x1e4] sm:$0xf0]  ;;  %v1926_v32 = vld [vmem:[%s2137_s26 + $0xe4] sm:$0xf] }
  0xee   : > { %v1691_v33 = vld [vmem:[%s2137_s26 + $0xe8] sm:$0xf0] }
  0xef   : > { %v1294_v36 = vmax.f32 %v1230_v34, 0.0  ;;  %v1199_v37 = vadd.f32 %v2228_v0, %v1131_v35  ;;  %v890_v38 = vpop.f32.mrf.mxu2  ;;  %v1958_v34 = vld [vmem:[%s2137_s26 + $0x1e4] sm:$0xf]  ;;  %v1819_v35 = vld [vmem:[%s2137_s26 + $0x1e8] sm:$0xf0] }
  0xf0   : > { %v1059_v39 = vpop.f32.mrf.mxu3 }
  0xf1   : > { %v1358_v40 = vpack.c.bf16 %v1294_v36, %v1294_v36  ;;  %v1263_v41 = vmax.f32 %v1199_v37, 0.0  ;;  %v1060_v42 = vadd.f32 %v1059_v39, %v890_v38  ;;  %v812_v43 = vpop.f32.mrf.mxu0 }
  0xf2   : > { %v981_v44 = vpop.f32.mrf.mxu1 }
  0xf3   : > { %1423 = vst.msk [vmem:[%s2236_s15 + $0x9c] sm:$0xf] %vm1383_vm0, %v1358_v40  ;;  %v1327_v45 = vpack.c.bf16 %v1263_v41, %v1263_v41  ;;  %v1163_v46 = vmul.f32 %v2223_v59, %v1060_v42  ;;  %v982_v47 = vadd.f32 %v981_v44, %v812_v43  ;;  %v1690_v40 = vor.u32 %v1927_v27, %v1689_v26 }
  0xf4   : > { %v1818_v41 = vor.u32 %v1959_v29, %v1817_v28  ;;  %v1694_v42 = vor.u32 %v1926_v32, %v1691_v33 }
  0xf5   : > { %1392 = vst.msk [vmem:[%s2236_s15 + $0x20] sm:$0xf] %vm1383_vm0, %v1327_v45  ;;  %v1231_v52 = vadd.f32 %v2228_v0, %v1163_v46  ;;  %v1132_v53 = vmul.f32 %v2223_v59, %v982_v47  ;;  %v1822_v47 = vor.u32 %v1958_v34, %v1819_v35 }
  0xf7   : > { %v1295_v58 = vmax.f32 %v1231_v52, 0.0  ;;  %v1200_v60 = vadd.f32 %v2228_v0, %v1132_v53  ;;  %v892_v61 = vpop.f32.mrf.mxu2 }
  0xf8   : > { %v1061_v62 = vpop.f32.mrf.mxu3 }
  0xf9   : > { %v1359_v3 = vpack.c.bf16 %v1295_v58, %v1295_v58  ;;  %v1264_v4 = vmax.f32 %v1200_v60, 0.0  ;;  %v1062_v5 = vadd.f32 %v1061_v62, %v892_v61  ;;  %v815_v6 = vpop.f32.mrf.mxu0 }
  0xfa   : > { %v984_v8 = vpop.f32.mrf.mxu1 }
  0xfb   : > { %1424 = vst.msk [vmem:[%s2236_s15 + $0xa0] sm:$0xf] %vm1383_vm0, %v1359_v3  ;;  %v1328_v9 = vpack.c.bf16 %v1264_v4, %v1264_v4  ;;  %v1164_v10 = vmul.f32 %v2223_v59, %v1062_v5  ;;  %v985_v11 = vadd.f32 %v984_v8, %v815_v6  ;;  %v1697_v4 = vld [vmem:[%s2137_s26 + $0xf0] sm:$0xf]  ;;  %v1929_v5 = vld [vmem:[%s2137_s26 + $0xf4] sm:$0xf0] }
  0xfc   : > { %854 = vmatmul.bf16.gmra.mxu0 %v1682_v63  ;;  %934 = vmatmul.bf16.gmra.mxu2 %v1810_v1  ;;  %v1825_v6 = vld [vmem:[%s2137_s26 + $0x1f0] sm:$0xf] }
  0xfd   : > { %1393 = vst.msk [vmem:[%s2236_s15 + $0x24] sm:$0xf] %vm1383_vm0, %v1328_v9  ;;  %v1232_v12 = vadd.f32 %v2228_v0, %v1164_v10  ;;  %v1133_v13 = vmul.f32 %v2223_v59, %v985_v11  ;;  %1023 = vmatmul.bf16.gmra.mxu1 %v1686_v2  ;;  %1103 = vmatmul.bf16.gmra.mxu3 %v1814_v7  ;;  %v1961_v7 = vld [vmem:[%s2137_s26 + $0x1f4] sm:$0xf0]  ;;  %v1928_v10 = vld [vmem:[%s2137_s26 + $0xf4] sm:$0xf] }
  0xfe   : > { %v1699_v11 = vld [vmem:[%s2137_s26 + $0xf8] sm:$0xf0] }
  0xff   : > { %v1296_v14 = vmax.f32 %v1232_v12, 0.0  ;;  %v1201_v15 = vadd.f32 %v2228_v0, %v1133_v13  ;;  %v895_v16 = vpop.f32.mrf.mxu2  ;;  %v1960_v12 = vld [vmem:[%s2137_s26 + $0x1f4] sm:$0xf]  ;;  %v1827_v13 = vld [vmem:[%s2137_s26 + $0x1f8] sm:$0xf0] }
 0x100   : > { %v1064_v17 = vpop.f32.mrf.mxu3 }
 0x101   : > { %v1360_v18 = vpack.c.bf16 %v1296_v14, %v1296_v14  ;;  %v1265_v19 = vmax.f32 %v1201_v15, 0.0  ;;  %v1065_v20 = vadd.f32 %v1064_v17, %v895_v16  ;;  %v817_v21 = vpop.f32.mrf.mxu0 }
 0x102   : > { %v986_v22 = vpop.f32.mrf.mxu1 }
 0x103   : > { %1425 = vst.msk [vmem:[%s2236_s15 + $0xa4] sm:$0xf] %vm1383_vm0, %v1360_v18  ;;  %v1329_v23 = vpack.c.bf16 %v1265_v19, %v1265_v19  ;;  %v1165_v24 = vmul.f32 %v2223_v59, %v1065_v20  ;;  %v987_v25 = vadd.f32 %v986_v22, %v817_v21  ;;  %v1698_v18 = vor.u32 %v1929_v5, %v1697_v4 }
 0x104   : > { %v1826_v19 = vor.u32 %v1961_v7, %v1825_v6  ;;  %v1702_v20 = vor.u32 %v1928_v10, %v1699_v11 }
 0x105   : > { %1394 = vst.msk [vmem:[%s2236_s15 + $0x28] sm:$0xf] %vm1383_vm0, %v1329_v23  ;;  %v1233_v30 = vadd.f32 %v2228_v0, %v1165_v24  ;;  %v1134_v31 = vmul.f32 %v2223_v59, %v987_v25  ;;  %v1830_v25 = vor.u32 %v1960_v12, %v1827_v13 }
 0x107   : > { %v1297_v36 = vmax.f32 %v1233_v30, 0.0  ;;  %v1202_v37 = vadd.f32 %v2228_v0, %v1134_v31  ;;  %v897_v38 = vpop.f32.mrf.mxu2 }
 0x108   : > { %v1066_v39 = vpop.f32.mrf.mxu3 }
 0x109   : > { %v1361_v43 = vpack.c.bf16 %v1297_v36, %v1297_v36  ;;  %v1266_v44 = vmax.f32 %v1202_v37, 0.0  ;;  %v1067_v45 = vadd.f32 %v1066_v39, %v897_v38  ;;  %v820_v46 = vpop.f32.mrf.mxu0 }
 0x10a   : > { %v989_v48 = vpop.f32.mrf.mxu1 }
 0x10b   : > { %1426 = vst.msk [vmem:[%s2236_s15 + $0xa8] sm:$0xf] %vm1383_vm0, %v1361_v43  ;;  %v1330_v49 = vpack.c.bf16 %v1266_v44, %v1266_v44  ;;  %v1166_v50 = vmul.f32 %v2223_v59, %v1067_v45  ;;  %v990_v51 = vadd.f32 %v989_v48, %v820_v46 }
 0x10c   : > { %859 = vmatmul.bf16.gmra.mxu0 %v1690_v40  ;;  %939 = vmatmul.bf16.gmra.mxu2 %v1818_v41 }
 0x10d   : > { %1395 = vst.msk [vmem:[%s2236_s15 + $0x2c] sm:$0xf] %vm1383_vm0, %v1330_v49  ;;  %v1234_v52 = vadd.f32 %v2228_v0, %v1166_v50  ;;  %v1135_v53 = vmul.f32 %v2223_v59, %v990_v51  ;;  %1028 = vmatmul.bf16.gmra.mxu1 %v1694_v42  ;;  %1108 = vmatmul.bf16.gmra.mxu3 %v1822_v47 }
 0x10f   : > { %v1298_v54 = vmax.f32 %v1234_v52, 0.0  ;;  %v1203_v55 = vadd.f32 %v2228_v0, %v1135_v53  ;;  %v900_v56 = vpop.f32.mrf.mxu2 }
 0x110   : > { %v1069_v57 = vpop.f32.mrf.mxu3 }
 0x111   : > { %v1362_v58 = vpack.c.bf16 %v1298_v54, %v1298_v54  ;;  %v1267_v60 = vmax.f32 %v1203_v55, 0.0  ;;  %v1070_v61 = vadd.f32 %v1069_v57, %v900_v56  ;;  %v822_v62 = vpop.f32.mrf.mxu0 }
 0x112   : > { %v991_v63 = vpop.f32.mrf.mxu1 }
 0x113   : > { %1427 = vst.msk [vmem:[%s2236_s15 + $0xac] sm:$0xf] %vm1383_vm0, %v1362_v58  ;;  %v1331_v1 = vpack.c.bf16 %v1267_v60, %v1267_v60  ;;  %v1167_v2 = vmul.f32 %v2223_v59, %v1070_v61  ;;  %v992_v3 = vadd.f32 %v991_v63, %v822_v62 }
 0x115   : > { %1396 = vst.msk [vmem:[%s2236_s15 + $0x30] sm:$0xf] %vm1383_vm0, %v1331_v1  ;;  %v1235_v8 = vadd.f32 %v2228_v0, %v1167_v2  ;;  %v1136_v9 = vmul.f32 %v2223_v59, %v992_v3 }
 0x117   : > { %v1299_v14 = vmax.f32 %v1235_v8, 0.0  ;;  %v1204_v15 = vadd.f32 %v2228_v0, %v1136_v9  ;;  %v902_v16 = vpop.f32.mrf.mxu2 }
 0x118   : > { %v1071_v17 = vpop.f32.mrf.mxu3 }
 0x119   : > { %v1363_v21 = vpack.c.bf16 %v1299_v14, %v1299_v14  ;;  %v1268_v22 = vmax.f32 %v1204_v15, 0.0  ;;  %v1072_v23 = vadd.f32 %v1071_v17, %v902_v16  ;;  %v825_v24 = vpop.f32.mrf.mxu0 }
 0x11a   : > { %v994_v26 = vpop.f32.mrf.mxu1 }
 0x11b   : > { %1428 = vst.msk [vmem:[%s2236_s15 + $0xb0] sm:$0xf] %vm1383_vm0, %v1363_v21  ;;  %v1332_v27 = vpack.c.bf16 %v1268_v22, %v1268_v22  ;;  %v1168_v28 = vmul.f32 %v2223_v59, %v1072_v23  ;;  %v995_v29 = vadd.f32 %v994_v26, %v825_v24 }
 0x11c   : > { %864 = vmatmul.bf16.gmra.mxu0 %v1698_v18  ;;  %944 = vmatmul.bf16.gmra.mxu2 %v1826_v19 }
 0x11d   : > { %1397 = vst.msk [vmem:[%s2236_s15 + $0x34] sm:$0xf] %vm1383_vm0, %v1332_v27  ;;  %v1236_v30 = vadd.f32 %v2228_v0, %v1168_v28  ;;  %v1137_v31 = vmul.f32 %v2223_v59, %v995_v29  ;;  %1033 = vmatmul.bf16.gmra.mxu1 %v1702_v20  ;;  %1113 = vmatmul.bf16.gmra.mxu3 %v1830_v25 }
 0x11f   : > { %v1300_v32 = vmax.f32 %v1236_v30, 0.0  ;;  %v1205_v33 = vadd.f32 %v2228_v0, %v1137_v31  ;;  %v905_v34 = vpop.f32.mrf.mxu2 }
 0x120   : > { %v1074_v35 = vpop.f32.mrf.mxu3 }
 0x121   : > { %v1364_v36 = vpack.c.bf16 %v1300_v32, %v1300_v32  ;;  %v1269_v37 = vmax.f32 %v1205_v33, 0.0  ;;  %v1075_v38 = vadd.f32 %v1074_v35, %v905_v34  ;;  %v827_v39 = vpop.f32.mrf.mxu0 }
 0x122   : > { %v996_v40 = vpop.f32.mrf.mxu1 }
 0x123   : > { %1429 = vst.msk [vmem:[%s2236_s15 + $0xb4] sm:$0xf] %vm1383_vm0, %v1364_v36  ;;  %v1333_v41 = vpack.c.bf16 %v1269_v37, %v1269_v37  ;;  %v1169_v42 = vmul.f32 %v2223_v59, %v1075_v38  ;;  %v997_v43 = vadd.f32 %v996_v40, %v827_v39 }
 0x125   : > { %1398 = vst.msk [vmem:[%s2236_s15 + $0x38] sm:$0xf] %vm1383_vm0, %v1333_v41  ;;  %v1237_v44 = vadd.f32 %v2228_v0, %v1169_v42  ;;  %v1138_v45 = vmul.f32 %v2223_v59, %v997_v43 }
 0x127   : > { %v1301_v46 = vmax.f32 %v1237_v44, 0.0  ;;  %v1206_v47 = vadd.f32 %v2228_v0, %v1138_v45  ;;  %v907_v48 = vpop.f32.mrf.mxu2 }
 0x128   : > { %v1076_v49 = vpop.f32.mrf.mxu3 }
 0x129   : > { %v1365_v50 = vpack.c.bf16 %v1301_v46, %v1301_v46  ;;  %v1270_v51 = vmax.f32 %v1206_v47, 0.0  ;;  %v1077_v52 = vadd.f32 %v1076_v49, %v907_v48  ;;  %v830_v53 = vpop.f32.mrf.mxu0 }
 0x12a   : > { %v999_v54 = vpop.f32.mrf.mxu1 }
 0x12b   : > { %1430 = vst.msk [vmem:[%s2236_s15 + $0xb8] sm:$0xf] %vm1383_vm0, %v1365_v50  ;;  %v1334_v55 = vpack.c.bf16 %v1270_v51, %v1270_v51  ;;  %v1170_v56 = vmul.f32 %v2223_v59, %v1077_v52  ;;  %v1000_v57 = vadd.f32 %v999_v54, %v830_v53 }
 0x12d   : > { %1399 = vst.msk [vmem:[%s2236_s15 + $0x3c] sm:$0xf] %vm1383_vm0, %v1334_v55  ;;  %v1238_v58 = vadd.f32 %v2228_v0, %v1170_v56  ;;  %v1139_v60 = vmul.f32 %v2223_v59, %v1000_v57 }
 0x12f   : > { %v1302_v61 = vmax.f32 %v1238_v58, 0.0  ;;  %v1207_v62 = vadd.f32 %v2228_v0, %v1139_v60  ;;  %v910_v63 = vpop.f32.mrf.mxu2 }
 0x130   : > { %v1079_v1 = vpop.f32.mrf.mxu3 }
 0x131   : > { %v1366_v2 = vpack.c.bf16 %v1302_v61, %v1302_v61  ;;  %v1271_v3 = vmax.f32 %v1207_v62, 0.0  ;;  %v1080_v4 = vadd.f32 %v1079_v1, %v910_v63  ;;  %v832_v5 = vpop.f32.mrf.mxu0 }
 0x132   : > { %v1001_v6 = vpop.f32.mrf.mxu1 }
 0x133   : > { %1431 = vst.msk [vmem:[%s2236_s15 + $0xbc] sm:$0xf] %vm1383_vm0, %v1366_v2  ;;  %v1335_v7 = vpack.c.bf16 %v1271_v3, %v1271_v3  ;;  %v1171_v8 = vmul.f32 %v2223_v59, %v1080_v4  ;;  %v1002_v9 = vadd.f32 %v1001_v6, %v832_v5 }
 0x135   : > { %1400 = vst.msk [vmem:[%s2236_s15 + $0x40] sm:$0xf] %vm1383_vm0, %v1335_v7  ;;  %v1239_v10 = vadd.f32 %v2228_v0, %v1171_v8  ;;  %v1140_v11 = vmul.f32 %v2223_v59, %v1002_v9 }
 0x137   : > { %v1303_v12 = vmax.f32 %v1239_v10, 0.0  ;;  %v1208_v13 = vadd.f32 %v2228_v0, %v1140_v11  ;;  %v912_v14 = vpop.f32.mrf.mxu2 }
 0x138   : > { %v1081_v15 = vpop.f32.mrf.mxu3 }
 0x139   : > { %v1367_v16 = vpack.c.bf16 %v1303_v12, %v1303_v12  ;;  %v1272_v17 = vmax.f32 %v1208_v13, 0.0  ;;  %v1082_v18 = vadd.f32 %v1081_v15, %v912_v14  ;;  %v835_v19 = vpop.f32.mrf.mxu0 }
 0x13a   : > { %v1004_v20 = vpop.f32.mrf.mxu1 }
 0x13b   : > { %1432 = vst.msk [vmem:[%s2236_s15 + $0xc0] sm:$0xf] %vm1383_vm0, %v1367_v16  ;;  %v1336_v21 = vpack.c.bf16 %v1272_v17, %v1272_v17  ;;  %v1172_v22 = vmul.f32 %v2223_v59, %v1082_v18  ;;  %v1005_v23 = vadd.f32 %v1004_v20, %v835_v19 }
 0x13d   : > { %1401 = vst.msk [vmem:[%s2236_s15 + $0x44] sm:$0xf] %vm1383_vm0, %v1336_v21  ;;  %v1240_v24 = vadd.f32 %v2228_v0, %v1172_v22  ;;  %v1141_v25 = vmul.f32 %v2223_v59, %v1005_v23 }
 0x13f   : > { %v1304_v26 = vmax.f32 %v1240_v24, 0.0  ;;  %v1209_v27 = vadd.f32 %v2228_v0, %v1141_v25  ;;  %v915_v28 = vpop.f32.mrf.mxu2 }
 0x140   : > { %v1084_v29 = vpop.f32.mrf.mxu3 }
 0x141   : > { %v1368_v30 = vpack.c.bf16 %v1304_v26, %v1304_v26  ;;  %v1273_v31 = vmax.f32 %v1209_v27, 0.0  ;;  %v1085_v32 = vadd.f32 %v1084_v29, %v915_v28  ;;  %v837_v33 = vpop.f32.mrf.mxu0 }
 0x142   : > { %v1006_v34 = vpop.f32.mrf.mxu1 }
 0x143   : > { %1433 = vst.msk [vmem:[%s2236_s15 + $0xc4] sm:$0xf] %vm1383_vm0, %v1368_v30  ;;  %v1337_v35 = vpack.c.bf16 %v1273_v31, %v1273_v31  ;;  %v1173_v36 = vmul.f32 %v2223_v59, %v1085_v32  ;;  %v1007_v37 = vadd.f32 %v1006_v34, %v837_v33 }
 0x145   : > { %1402 = vst.msk [vmem:[%s2236_s15 + $0x48] sm:$0xf] %vm1383_vm0, %v1337_v35  ;;  %v1241_v38 = vadd.f32 %v2228_v0, %v1173_v36  ;;  %v1142_v39 = vmul.f32 %v2223_v59, %v1007_v37 }
 0x147   : > { %v1305_v40 = vmax.f32 %v1241_v38, 0.0  ;;  %v1210_v41 = vadd.f32 %v2228_v0, %v1142_v39  ;;  %v917_v42 = vpop.f32.mrf.mxu2 }
 0x148   : > { %v1086_v43 = vpop.f32.mrf.mxu3 }
 0x149   : > { %v1369_v44 = vpack.c.bf16 %v1305_v40, %v1305_v40  ;;  %v1274_v45 = vmax.f32 %v1210_v41, 0.0  ;;  %v1087_v46 = vadd.f32 %v1086_v43, %v917_v42  ;;  %v840_v47 = vpop.f32.mrf.mxu0 }
 0x14a   : > { %v1009_v48 = vpop.f32.mrf.mxu1 }
 0x14b   : > { %1434 = vst.msk [vmem:[%s2236_s15 + $0xc8] sm:$0xf] %vm1383_vm0, %v1369_v44  ;;  %v1338_v49 = vpack.c.bf16 %v1274_v45, %v1274_v45  ;;  %v1174_v50 = vmul.f32 %v2223_v59, %v1087_v46  ;;  %v1010_v51 = vadd.f32 %v1009_v48, %v840_v47 }
 0x14d   : > { %1403 = vst.msk [vmem:[%s2236_s15 + $0x4c] sm:$0xf] %vm1383_vm0, %v1338_v49  ;;  %v1242_v52 = vadd.f32 %v2228_v0, %v1174_v50  ;;  %v1143_v53 = vmul.f32 %v2223_v59, %v1010_v51 }
 0x14f   : > { %v1306_v54 = vmax.f32 %v1242_v52, 0.0  ;;  %v1211_v55 = vadd.f32 %v2228_v0, %v1143_v53  ;;  %v920_v56 = vpop.f32.mrf.mxu2 }
 0x150   : > { %v1089_v57 = vpop.f32.mrf.mxu3 }
 0x151   : > { %v1370_v58 = vpack.c.bf16 %v1306_v54, %v1306_v54  ;;  %v1275_v60 = vmax.f32 %v1211_v55, 0.0  ;;  %v1090_v61 = vadd.f32 %v1089_v57, %v920_v56  ;;  %v842_v62 = vpop.f32.mrf.mxu0 }
 0x152   : > { %v1011_v63 = vpop.f32.mrf.mxu1 }
 0x153   : > { %1435 = vst.msk [vmem:[%s2236_s15 + $0xcc] sm:$0xf] %vm1383_vm0, %v1370_v58  ;;  %v1339_v1 = vpack.c.bf16 %v1275_v60, %v1275_v60  ;;  %v1175_v2 = vmul.f32 %v2223_v59, %v1090_v61  ;;  %v1012_v3 = vadd.f32 %v1011_v63, %v842_v62  ;;  %v2489_v58 = vld [vmem:[%s2569_s2] ss:$0 sm:$0xff] }
 0x155   : > { %1404 = vst.msk [vmem:[%s2236_s15 + $0x50] sm:$0xf] %vm1383_vm0, %v1339_v1  ;;  %v1243_v4 = vadd.f32 %v2228_v0, %v1175_v2  ;;  %v1144_v5 = vmul.f32 %v2223_v59, %v1012_v3 }
 0x157   : > { %v1307_v6 = vmax.f32 %v1243_v4, 0.0  ;;  %v1212_v7 = vadd.f32 %v2228_v0, %v1144_v5  ;;  %v922_v8 = vpop.f32.mrf.mxu2 }
 0x158   : > { %v1091_v9 = vpop.f32.mrf.mxu3 }
 0x159   : > { %v1371_v10 = vpack.c.bf16 %v1307_v6, %v1307_v6  ;;  %v1276_v11 = vmax.f32 %v1212_v7, 0.0  ;;  %v1092_v12 = vadd.f32 %v1091_v9, %v922_v8  ;;  %v845_v13 = vpop.f32.mrf.mxu0 }
 0x15a   : > { %v1014_v14 = vpop.f32.mrf.mxu1 }
 0x15b   : > { %1436 = vst.msk [vmem:[%s2236_s15 + $0xd0] sm:$0xf] %vm1383_vm0, %v1371_v10  ;;  %v1340_v15 = vpack.c.bf16 %v1276_v11, %v1276_v11  ;;  %v1176_v16 = vmul.f32 %v2223_v59, %v1092_v12  ;;  %v1015_v17 = vadd.f32 %v1014_v14, %v845_v13 }
 0x15d   : > { %1405 = vst.msk [vmem:[%s2236_s15 + $0x54] sm:$0xf] %vm1383_vm0, %v1340_v15  ;;  %v1244_v18 = vadd.f32 %v2228_v0, %v1176_v16  ;;  %v1145_v19 = vmul.f32 %v2223_v59, %v1015_v17 }
 0x15f   : > { %v1308_v20 = vmax.f32 %v1244_v18, 0.0  ;;  %v1213_v21 = vadd.f32 %v2228_v0, %v1145_v19  ;;  %v925_v22 = vpop.f32.mrf.mxu2 }
 0x160   : > { %v1094_v23 = vpop.f32.mrf.mxu3 }
 0x161   : > { %v1372_v24 = vpack.c.bf16 %v1308_v20, %v1308_v20  ;;  %v1277_v25 = vmax.f32 %v1213_v21, 0.0  ;;  %v1095_v26 = vadd.f32 %v1094_v23, %v925_v22  ;;  %v847_v27 = vpop.f32.mrf.mxu0 }
 0x162   : > { %v1016_v28 = vpop.f32.mrf.mxu1 }
 0x163   : > { %1437 = vst.msk [vmem:[%s2236_s15 + $0xd4] sm:$0xf] %vm1383_vm0, %v1372_v24  ;;  %v1341_v29 = vpack.c.bf16 %v1277_v25, %v1277_v25  ;;  %v1177_v30 = vmul.f32 %v2223_v59, %v1095_v26  ;;  %v1017_v31 = vadd.f32 %v1016_v28, %v847_v27 }
 0x165   : > { %1406 = vst.msk [vmem:[%s2236_s15 + $0x58] sm:$0xf] %vm1383_vm0, %v1341_v29  ;;  %v1245_v32 = vadd.f32 %v2228_v0, %v1177_v30  ;;  %v1146_v33 = vmul.f32 %v2223_v59, %v1017_v31 }
 0x167   : > { %v1309_v34 = vmax.f32 %v1245_v32, 0.0  ;;  %v1214_v35 = vadd.f32 %v2228_v0, %v1146_v33  ;;  %v927_v36 = vpop.f32.mrf.mxu2 }
 0x168   : > { %v1096_v37 = vpop.f32.mrf.mxu3 }
 0x169   : > { %v1373_v38 = vpack.c.bf16 %v1309_v34, %v1309_v34  ;;  %v1278_v39 = vmax.f32 %v1214_v35, 0.0  ;;  %v1097_v40 = vadd.f32 %v1096_v37, %v927_v36  ;;  %v850_v41 = vpop.f32.mrf.mxu0 }
 0x16a   : > { %v1019_v42 = vpop.f32.mrf.mxu1 }
 0x16b   : > { %1438 = vst.msk [vmem:[%s2236_s15 + $0xd8] sm:$0xf] %vm1383_vm0, %v1373_v38  ;;  %v1342_v43 = vpack.c.bf16 %v1278_v39, %v1278_v39  ;;  %v1178_v44 = vmul.f32 %v2223_v59, %v1097_v40  ;;  %v1020_v45 = vadd.f32 %v1019_v42, %v850_v41 }
 0x16d   : > { %1407 = vst.msk [vmem:[%s2236_s15 + $0x5c] sm:$0xf] %vm1383_vm0, %v1342_v43  ;;  %v1246_v46 = vadd.f32 %v2228_v0, %v1178_v44  ;;  %v1147_v47 = vmul.f32 %v2223_v59, %v1020_v45 }
 0x16f   : > { %v1310_v48 = vmax.f32 %v1246_v46, 0.0  ;;  %v1215_v49 = vadd.f32 %v2228_v0, %v1147_v47  ;;  %v930_v50 = vpop.f32.mrf.mxu2  ;;  %v2497_v0 = vld [vmem:[%s2570_s3] ss:$0 sm:$0xff] }
 0x170   : > { %v1099_v51 = vpop.f32.mrf.mxu3 }
 0x171   : > { %v1374_v52 = vpack.c.bf16 %v1310_v48, %v1310_v48  ;;  %v1279_v53 = vmax.f32 %v1215_v49, 0.0  ;;  %v1100_v54 = vadd.f32 %v1099_v51, %v930_v50  ;;  %v852_v55 = vpop.f32.mrf.mxu0 }
 0x172   : > { %v1021_v56 = vpop.f32.mrf.mxu1 }
 0x173   : > { %1439 = vst.msk [vmem:[%s2236_s15 + $0xdc] sm:$0xf] %vm1383_vm0, %v1374_v52  ;;  %v1343_v57 = vpack.c.bf16 %v1279_v53, %v1279_v53  ;;  %v1179_v59 = vmul.f32 %v2489_v58, %v1100_v54  ;;  %v1022_v60 = vadd.f32 %v1021_v56, %v852_v55 }
 0x175   : > { %1408 = vst.msk [vmem:[%s2236_s15 + $0x60] sm:$0xf] %vm1383_vm0, %v1343_v57  ;;  %v1247_v61 = vadd.f32 %v2497_v0, %v1179_v59  ;;  %v1148_v62 = vmul.f32 %v2489_v58, %v1022_v60 }
 0x177   : > { %v1311_v63 = vmax.f32 %v1247_v61, 0.0  ;;  %v1216_v1 = vadd.f32 %v2497_v0, %v1148_v62  ;;  %v932_v2 = vpop.f32.mrf.mxu2 }
 0x178   : > { %v1101_v3 = vpop.f32.mrf.mxu3 }
 0x179   : > { %v1375_v4 = vpack.c.bf16 %v1311_v63, %v1311_v63  ;;  %v1280_v5 = vmax.f32 %v1216_v1, 0.0  ;;  %v1102_v6 = vadd.f32 %v1101_v3, %v932_v2  ;;  %v855_v7 = vpop.f32.mrf.mxu0 }
 0x17a   : > { %v1024_v8 = vpop.f32.mrf.mxu1 }
 0x17b   : > { %1440 = vst.msk [vmem:[%s2236_s15 + $0xe0] sm:$0xf] %vm1383_vm0, %v1375_v4  ;;  %v1344_v9 = vpack.c.bf16 %v1280_v5, %v1280_v5  ;;  %v1180_v10 = vmul.f32 %v2489_v58, %v1102_v6  ;;  %v1025_v11 = vadd.f32 %v1024_v8, %v855_v7 }
 0x17d   : > { %1409 = vst.msk [vmem:[%s2236_s15 + $0x64] sm:$0xf] %vm1383_vm0, %v1344_v9  ;;  %v1248_v12 = vadd.f32 %v2497_v0, %v1180_v10  ;;  %v1149_v13 = vmul.f32 %v2489_v58, %v1025_v11 }
 0x17f   : > { %v1312_v14 = vmax.f32 %v1248_v12, 0.0  ;;  %v1217_v15 = vadd.f32 %v2497_v0, %v1149_v13  ;;  %v935_v16 = vpop.f32.mrf.mxu2 }
 0x180   : > { %v1104_v17 = vpop.f32.mrf.mxu3 }
 0x181   : > { %v1376_v18 = vpack.c.bf16 %v1312_v14, %v1312_v14  ;;  %v1281_v19 = vmax.f32 %v1217_v15, 0.0  ;;  %v1105_v20 = vadd.f32 %v1104_v17, %v935_v16  ;;  %v857_v21 = vpop.f32.mrf.mxu0 }
 0x182   : > { %v1026_v22 = vpop.f32.mrf.mxu1 }
 0x183   : > { %1441 = vst.msk [vmem:[%s2236_s15 + $0xe4] sm:$0xf] %vm1383_vm0, %v1376_v18  ;;  %v1345_v23 = vpack.c.bf16 %v1281_v19, %v1281_v19  ;;  %v1181_v24 = vmul.f32 %v2489_v58, %v1105_v20  ;;  %v1027_v25 = vadd.f32 %v1026_v22, %v857_v21 }
 0x185   : > { %1410 = vst.msk [vmem:[%s2236_s15 + $0x68] sm:$0xf] %vm1383_vm0, %v1345_v23  ;;  %v1249_v26 = vadd.f32 %v2497_v0, %v1181_v24  ;;  %v1150_v27 = vmul.f32 %v2489_v58, %v1027_v25 }
 0x187   : > { %v1313_v28 = vmax.f32 %v1249_v26, 0.0  ;;  %v1218_v29 = vadd.f32 %v2497_v0, %v1150_v27  ;;  %v937_v30 = vpop.f32.mrf.mxu2 }
 0x188   : > { %v1106_v31 = vpop.f32.mrf.mxu3 }
 0x189   : > { %v1377_v32 = vpack.c.bf16 %v1313_v28, %v1313_v28  ;;  %v1282_v33 = vmax.f32 %v1218_v29, 0.0  ;;  %v1107_v34 = vadd.f32 %v1106_v31, %v937_v30  ;;  %v860_v35 = vpop.f32.mrf.mxu0 }
 0x18a   : > { %v1029_v36 = vpop.f32.mrf.mxu1 }
 0x18b   : > { %1442 = vst.msk [vmem:[%s2236_s15 + $0xe8] sm:$0xf] %vm1383_vm0, %v1377_v32  ;;  %v1346_v37 = vpack.c.bf16 %v1282_v33, %v1282_v33  ;;  %v1182_v38 = vmul.f32 %v2489_v58, %v1107_v34  ;;  %v1030_v39 = vadd.f32 %v1029_v36, %v860_v35 }
 0x18d   : > { %1411 = vst.msk [vmem:[%s2236_s15 + $0x6c] sm:$0xf] %vm1383_vm0, %v1346_v37  ;;  %v1250_v40 = vadd.f32 %v2497_v0, %v1182_v38  ;;  %v1151_v41 = vmul.f32 %v2489_v58, %v1030_v39 }
 0x18f   : > { %v1314_v42 = vmax.f32 %v1250_v40, 0.0  ;;  %v1219_v43 = vadd.f32 %v2497_v0, %v1151_v41  ;;  %v940_v44 = vpop.f32.mrf.mxu2 }
 0x190   : > { %v1109_v45 = vpop.f32.mrf.mxu3 }
 0x191   : > { %v1378_v46 = vpack.c.bf16 %v1314_v42, %v1314_v42  ;;  %v1283_v47 = vmax.f32 %v1219_v43, 0.0  ;;  %v1110_v48 = vadd.f32 %v1109_v45, %v940_v44  ;;  %v862_v49 = vpop.f32.mrf.mxu0 }
 0x192   : > { %v1031_v50 = vpop.f32.mrf.mxu1 }
 0x193   : > { %1443 = vst.msk [vmem:[%s2236_s15 + $0xec] sm:$0xf] %vm1383_vm0, %v1378_v46  ;;  %v1347_v51 = vpack.c.bf16 %v1283_v47, %v1283_v47  ;;  %v1183_v52 = vmul.f32 %v2489_v58, %v1110_v48  ;;  %v1032_v53 = vadd.f32 %v1031_v50, %v862_v49 }
 0x195   : > { %1412 = vst.msk [vmem:[%s2236_s15 + $0x70] sm:$0xf] %vm1383_vm0, %v1347_v51  ;;  %v1251_v54 = vadd.f32 %v2497_v0, %v1183_v52  ;;  %v1152_v55 = vmul.f32 %v2489_v58, %v1032_v53 }
 0x197   : > { %v1315_v56 = vmax.f32 %v1251_v54, 0.0  ;;  %v1220_v57 = vadd.f32 %v2497_v0, %v1152_v55  ;;  %v942_v59 = vpop.f32.mrf.mxu2 }
 0x198   : > { %v1111_v60 = vpop.f32.mrf.mxu3 }
 0x199   : > { %v1379_v61 = vpack.c.bf16 %v1315_v56, %v1315_v56  ;;  %v1284_v62 = vmax.f32 %v1220_v57, 0.0  ;;  %v1112_v63 = vadd.f32 %v1111_v60, %v942_v59  ;;  %v865_v1 = vpop.f32.mrf.mxu0 }
 0x19a   : > { %v1034_v2 = vpop.f32.mrf.mxu1 }
 0x19b   : > { %1444 = vst.msk [vmem:[%s2236_s15 + $0xf0] sm:$0xf] %vm1383_vm0, %v1379_v61  ;;  %v1348_v3 = vpack.c.bf16 %v1284_v62, %v1284_v62  ;;  %v1184_v4 = vmul.f32 %v2489_v58, %v1112_v63  ;;  %v1035_v5 = vadd.f32 %v1034_v2, %v865_v1 }
 0x19d   : > { %1413 = vst.msk [vmem:[%s2236_s15 + $0x74] sm:$0xf] %vm1383_vm0, %v1348_v3  ;;  %v1252_v6 = vadd.f32 %v2497_v0, %v1184_v4  ;;  %v1153_v7 = vmul.f32 %v2489_v58, %v1035_v5 }
 0x19f   : > { %v1316_v8 = vmax.f32 %v1252_v6, 0.0  ;;  %v1221_v9 = vadd.f32 %v2497_v0, %v1153_v7  ;;  %v945_v10 = vpop.f32.mrf.mxu2 }
 0x1a0   : > { %v1114_v11 = vpop.f32.mrf.mxu3 }
 0x1a1   : > { %v1380_v12 = vpack.c.bf16 %v1316_v8, %v1316_v8  ;;  %v1285_v13 = vmax.f32 %v1221_v9, 0.0  ;;  %v1115_v14 = vadd.f32 %v1114_v11, %v945_v10  ;;  %v867_v15 = vpop.f32.mrf.mxu0 }
 0x1a2   : > { %v1036_v16 = vpop.f32.mrf.mxu1 }
 0x1a3   : > { %1445 = vst.msk [vmem:[%s2236_s15 + $0xf4] sm:$0xf] %vm1383_vm0, %v1380_v12  ;;  %v1349_v17 = vpack.c.bf16 %v1285_v13, %v1285_v13  ;;  %v1185_v18 = vmul.f32 %v2489_v58, %v1115_v14  ;;  %v1037_v19 = vadd.f32 %v1036_v16, %v867_v15 }
 0x1a5   : > { %1414 = vst.msk [vmem:[%s2236_s15 + $0x78] sm:$0xf] %vm1383_vm0, %v1349_v17  ;;  %v1253_v20 = vadd.f32 %v2497_v0, %v1185_v18  ;;  %v1154_v21 = vmul.f32 %v2489_v58, %v1037_v19 }
 0x1a7   : > { %v1317_v22 = vmax.f32 %v1253_v20, 0.0  ;;  %v1222_v23 = vadd.f32 %v2497_v0, %v1154_v21  ;;  %v947_v24 = vpop.f32.mrf.mxu2 }
 0x1a8   : > { %v1116_v25 = vpop.f32.mrf.mxu3 }
 0x1a9   : > { %v1381_v26 = vpack.c.bf16 %v1317_v22, %v1317_v22  ;;  %v1286_v27 = vmax.f32 %v1222_v23, 0.0  ;;  %v1117_v28 = vadd.f32 %v1116_v25, %v947_v24 }
 0x1ab   : > { %1446 = vst.msk [vmem:[%s2236_s15 + $0xf8] sm:$0xf] %vm1383_vm0, %v1381_v26  ;;  %v1350_v29 = vpack.c.bf16 %v1286_v27, %v1286_v27  ;;  %v1186_v30 = vmul.f32 %v2489_v58, %v1117_v28 }
 0x1ad   : > { %1415 = vst.msk [vmem:[%s2236_s15 + $0x7c] sm:$0xf] %vm1383_vm0, %v1350_v29  ;;  %v1254_v31 = vadd.f32 %v2497_v0, %v1186_v30 }
 0x1af   : > { %v1318_v32 = vmax.f32 %v1254_v31, 0.0 }
 0x1b1   : > { %v1382_v33 = vpack.c.bf16 %v1318_v32, %v1318_v32 }
 0x1b3   : > { %1447 = vst.msk [vmem:[%s2236_s15 + $0xfc] sm:$0xf] %vm1383_vm0, %v1382_v33 }
 0x1b4 PF: > { %s14_s17 = sadd.s32 1, %s2044_s17   ;;  %s2572_s15 = smov %s2040_s16 }
 0x1b5   : > { %p11_p5 = scmp.ge.s32.totalorder %s14_s17, 6   ;;  %s2573_s16 = smov %s2575_s18 }
 0x1b7   :  { %13 = sbr.rel (!%p11_p5) target bundleno = 2 (0x2), region = 75 }

</bundles_post_ra>
